<compile_context>
chip_gen: v5e
topology: v5e:2x2
jax: 0.10.0
libtpu: 0.0.40
codegen_flags: <defaults>
</compile_context>

<pallas_src>
import jax
import jax.numpy as jnp
from jax import lax
from jax.experimental import pallas as pl
from jax.experimental.pallas import tpu as pltpu

# Module hyper-parameters (small but TPU-tile friendly: lane dim = 128).
EMB_SIZE = 128
HIDDEN_SIZE = 256
LN_EPS = 1e-5


def _ffn_kernel(x_ref, w1_ref, b1_ref, w2_ref, b2_ref, g_ref, beta_ref, o_ref):
    # x_ref: (TM, E) row block.  Everything else is fully resident in VMEM.
    x = x_ref[...]                                              # (TM, E) f32

    # l1 + ReLU  (MXU matmul, f32 accumulate)
    h = jnp.dot(x, w1_ref[...],
                preferred_element_type=jnp.float32,
                precision=lax.Precision.HIGHEST) + b1_ref[...]  # (TM, H)
    h = jnp.maximum(h, 0.0)

    # l2
    y = jnp.dot(h, w2_ref[...],
                preferred_element_type=jnp.float32,
                precision=lax.Precision.HIGHEST) + b2_ref[...]  # (TM, E)

    # residual + LayerNorm over the embedding (last) dim
    z = y + x
    mean = jnp.mean(z, axis=-1, keepdims=True)
    var = jnp.mean((z - mean) * (z - mean), axis=-1, keepdims=True)
    zn = (z - mean) * lax.rsqrt(var + LN_EPS)
    o_ref[...] = (zn * g_ref[...] + beta_ref[...]).astype(o_ref.dtype)


def feedforward(x, w1, b1, w2, b2, gamma, beta, *, block_rows=128):
    """x: (..., E) float32 -> (..., E) float32 (Linear->ReLU->Linear->LN(x+res))."""
    orig_shape = x.shape
    E = orig_shape[-1]
    H = w1.shape[1]
    x2d = x.reshape(-1, E)
    n_rows = x2d.shape[0]

    # Row block: multiple of 8 sublanes; single step if the problem is small.
    tm = min(block_rows, n_rows)
    assert n_rows % tm == 0, "row count must divide the row block"
    grid = (n_rows // tm,)

    # 2-D parameter views so every VMEM tile is (sublane, lane)-shaped.
    b1_2d = b1.reshape(1, H)
    b2_2d = b2.reshape(1, E)
    g_2d = gamma.reshape(1, E)
    beta_2d = beta.reshape(1, E)

    out2d = pl.pallas_call(
        _ffn_kernel,
        out_shape=jax.ShapeDtypeStruct((n_rows, E), jnp.float32),
        grid=grid,
        in_specs=[
            pl.BlockSpec((tm, E), lambda i: (i, 0)),   # x row block
            pl.BlockSpec((E, H), lambda i: (0, 0)),    # w1 (resident)
            pl.BlockSpec((1, H), lambda i: (0, 0)),    # b1
            pl.BlockSpec((H, E), lambda i: (0, 0)),    # w2 (resident)
            pl.BlockSpec((1, E), lambda i: (0, 0)),    # b2
            pl.BlockSpec((1, E), lambda i: (0, 0)),    # gamma
            pl.BlockSpec((1, E), lambda i: (0, 0)),    # beta
        ],
        out_specs=pl.BlockSpec((tm, E), lambda i: (i, 0)),
        compiler_params=pltpu.CompilerParams(
            # Row blocks are independent -> shard across TCs on v7x.
            dimension_semantics=("parallel",),
        ),
    )(x2d, w1, b1_2d, w2, b2_2d, g_2d, beta_2d)

    return out2d.reshape(orig_shape)


def _reference(x, w1, b1, w2, b2, gamma, beta):
    h = jnp.maximum(
        jnp.dot(x, w1, precision=lax.Precision.HIGHEST) + b1, 0.0)
    y = jnp.dot(h, w2, precision=lax.Precision.HIGHEST) + b2
    z = y + x
    mean = jnp.mean(z, axis=-1, keepdims=True)
    var = jnp.mean((z - mean) ** 2, axis=-1, keepdims=True)
    return (z - mean) / jnp.sqrt(var + LN_EPS) * gamma + beta


if __name__ == "__main__":
    key = jax.random.PRNGKey(0)
    k_x, k_w1, k_b1, k_w2, k_b2, k_g, k_bt = jax.random.split(key, 7)

    B, S = 2, 8
    E, H = EMB_SIZE, HIDDEN_SIZE

    # Synthetic parameters (PyTorch-Linear-like scale: ~1/sqrt(fan_in)).
    x = jax.random.normal(k_x, (B, S, E), jnp.float32)
    w1 = jax.random.normal(k_w1, (E, H), jnp.float32) * (1.0 / (E ** 0.5))
    b1 = jax.random.normal(k_b1, (H,), jnp.float32) * 0.01
    w2 = jax.random.normal(k_w2, (H, E), jnp.float32) * (1.0 / (H ** 0.5))
    b2 = jax.random.normal(k_b2, (E,), jnp.float32) * 0.01
    gamma = 1.0 + 0.1 * jax.random.normal(k_g, (E,), jnp.float32)
    beta = 0.1 * jax.random.normal(k_bt, (E,), jnp.float32)

    out = feedforward(x, w1, b1, w2, b2, gamma, beta)
    out = jax.block_until_ready(out)

    ref = _reference(x, w1, b1, w2, b2, gamma, beta)
    assert out.shape == (B, S, E)
    assert jnp.allclose(out, ref, atol=1e-4, rtol=1e-4), "mismatch vs reference"

    print("KERNEL_OK")
</pallas_src>

<mosaic_0001>
module attributes {stable_mosaic.version = 11 : i64} {
  func.func @_ffn_kernel(%arg0: i32, %arg1: memref<16x128xf32, #tpu.memory_space<vmem>>, %arg2: memref<128x256xf32, #tpu.memory_space<vmem>>, %arg3: memref<1x256xf32, #tpu.memory_space<vmem>>, %arg4: memref<256x128xf32, #tpu.memory_space<vmem>>, %arg5: memref<1x128xf32, #tpu.memory_space<vmem>>, %arg6: memref<1x128xf32, #tpu.memory_space<vmem>>, %arg7: memref<1x128xf32, #tpu.memory_space<vmem>>, %arg8: memref<16x128xf32, #tpu.memory_space<vmem>>) attributes {dimension_semantics = [#tpu.dimension_semantics<parallel>], iteration_bounds = array<i64: 1>, scalar_prefetch = 0 : i64, scratch_operands = 0 : i64, tpu.core_type = #tpu.core_type<tc>, window_params = [{transform_indices = @transform_0, window_bounds = array<i64: 16, 128>}, {pipeline_mode = #tpu.pipeline_mode<synchronous>, transform_indices = @transform_1, window_bounds = array<i64: 128, 256>}, {pipeline_mode = #tpu.pipeline_mode<synchronous>, transform_indices = @transform_2, window_bounds = array<i64: 1, 256>}, {pipeline_mode = #tpu.pipeline_mode<synchronous>, transform_indices = @transform_3, window_bounds = array<i64: 256, 128>}, {pipeline_mode = #tpu.pipeline_mode<synchronous>, transform_indices = @transform_4, window_bounds = array<i64: 1, 128>}, {pipeline_mode = #tpu.pipeline_mode<synchronous>, transform_indices = @transform_5, window_bounds = array<i64: 1, 128>}, {pipeline_mode = #tpu.pipeline_mode<synchronous>, transform_indices = @transform_6, window_bounds = array<i64: 1, 128>}, {transform_indices = @transform_7, window_bounds = array<i64: 16, 128>}]} {
    %c0 = arith.constant 0 : index
    %c0_0 = arith.constant 0 : index
    %0 = vector.load %arg1[%c0, %c0_0] : memref<16x128xf32, #tpu.memory_space<vmem>>, vector<16x128xf32>
    %c0_1 = arith.constant 0 : index
    %c0_2 = arith.constant 0 : index
    %1 = vector.load %arg2[%c0_1, %c0_2] : memref<128x256xf32, #tpu.memory_space<vmem>>, vector<128x256xf32>
    %cst = arith.constant dense<0.000000e+00> : vector<16x256xf32>
    %2 = tpu.matmul %0, %1, %cst {dimension_numbers = #tpu.dot_dimension_numbers<[1], [0], [0], [1], [0, 0, 1, 1], [], []>, precision = #tpu.contract_precision<fp32>} : vector<16x128xf32>, vector<128x256xf32>, vector<16x256xf32> -> vector<16x256xf32>
    %c0_3 = arith.constant 0 : index
    %c0_4 = arith.constant 0 : index
    %3 = vector.load %arg3[%c0_3, %c0_4] : memref<1x256xf32, #tpu.memory_space<vmem>>, vector<1x256xf32>
    %4 = vector.broadcast %3 : vector<1x256xf32> to vector<16x256xf32>
    %5 = arith.addf %2, %4 : vector<16x256xf32>
    %cst_5 = arith.constant 0.000000e+00 : f32
    %6 = vector.broadcast %cst_5 : f32 to vector<16x256xf32>
    %7 = arith.maximumf %5, %6 : vector<16x256xf32>
    %c0_6 = arith.constant 0 : index
    %c0_7 = arith.constant 0 : index
    %8 = vector.load %arg4[%c0_6, %c0_7] : memref<256x128xf32, #tpu.memory_space<vmem>>, vector<256x128xf32>
    %cst_8 = arith.constant dense<0.000000e+00> : vector<16x128xf32>
    %9 = tpu.matmul %7, %8, %cst_8 {dimension_numbers = #tpu.dot_dimension_numbers<[1], [0], [0], [1], [0, 0, 1, 1], [], []>, precision = #tpu.contract_precision<fp32>} : vector<16x256xf32>, vector<256x128xf32>, vector<16x128xf32> -> vector<16x128xf32>
    %c0_9 = arith.constant 0 : index
    %c0_10 = arith.constant 0 : index
    %10 = vector.load %arg5[%c0_9, %c0_10] : memref<1x128xf32, #tpu.memory_space<vmem>>, vector<1x128xf32>
    %11 = vector.broadcast %10 : vector<1x128xf32> to vector<16x128xf32>
    %12 = arith.addf %9, %11 : vector<16x128xf32>
    %13 = arith.addf %12, %0 : vector<16x128xf32>
    %cst_11 = arith.constant dense<0.000000e+00> : vector<16xf32>
    %14 = vector.multi_reduction <add>, %13, %cst_11 [1] : vector<16x128xf32> to vector<16xf32>
    %15 = vector.shape_cast %14 : vector<16xf32> to vector<16x1xf32>
    %cst_12 = arith.constant 1.280000e+02 : f32
    %16 = vector.broadcast %cst_12 : f32 to vector<16x1xf32>
    %17 = arith.divf %15, %16 : vector<16x1xf32>
    %18 = vector.broadcast %17 : vector<16x1xf32> to vector<16x128xf32>
    %19 = arith.subf %13, %18 : vector<16x128xf32>
    %20 = vector.broadcast %17 : vector<16x1xf32> to vector<16x128xf32>
    %21 = arith.subf %13, %20 : vector<16x128xf32>
    %22 = arith.mulf %19, %21 : vector<16x128xf32>
    %cst_13 = arith.constant dense<0.000000e+00> : vector<16xf32>
    %23 = vector.multi_reduction <add>, %22, %cst_13 [1] : vector<16x128xf32> to vector<16xf32>
    %24 = vector.shape_cast %23 : vector<16xf32> to vector<16x1xf32>
    %cst_14 = arith.constant 1.280000e+02 : f32
    %25 = vector.broadcast %cst_14 : f32 to vector<16x1xf32>
    %26 = arith.divf %24, %25 : vector<16x1xf32>
    %27 = vector.broadcast %17 : vector<16x1xf32> to vector<16x128xf32>
    %28 = arith.subf %13, %27 : vector<16x128xf32>
    %cst_15 = arith.constant 9.99999974E-6 : f32
    %29 = vector.broadcast %cst_15 : f32 to vector<16x1xf32>
    %30 = arith.addf %26, %29 : vector<16x1xf32>
    %31 = math.rsqrt %30 : vector<16x1xf32>
    %32 = vector.broadcast %31 : vector<16x1xf32> to vector<16x128xf32>
    %33 = arith.mulf %28, %32 : vector<16x128xf32>
    %c0_16 = arith.constant 0 : index
    %c0_17 = arith.constant 0 : index
    %34 = vector.load %arg6[%c0_16, %c0_17] : memref<1x128xf32, #tpu.memory_space<vmem>>, vector<1x128xf32>
    %35 = vector.broadcast %34 : vector<1x128xf32> to vector<16x128xf32>
    %36 = arith.mulf %33, %35 : vector<16x128xf32>
    %c0_18 = arith.constant 0 : index
    %c0_19 = arith.constant 0 : index
    %37 = vector.load %arg7[%c0_18, %c0_19] : memref<1x128xf32, #tpu.memory_space<vmem>>, vector<1x128xf32>
    %38 = vector.broadcast %37 : vector<1x128xf32> to vector<16x128xf32>
    %39 = arith.addf %36, %38 : vector<16x128xf32>
    %c0_20 = arith.constant 0 : index
    %c0_21 = arith.constant 0 : index
    %40 = vector.load %arg8[%c0_20, %c0_21] : memref<16x128xf32, #tpu.memory_space<vmem>>, vector<16x128xf32>
    tpu.vector_store %arg8[%c0_20, %c0_21], %39 {strides = array<i32>} : memref<16x128xf32, #tpu.memory_space<vmem>>, vector<16x128xf32>,
    return
  }
  func.func @transform_0(%arg0: i32) -> (i32, i32) {
    %c0_i32 = arith.constant 0 : i32
    %c0_i32_0 = arith.constant 0 : i32
    return %arg0, %c0_i32 : i32, i32
  }
  func.func @transform_1(%arg0: i32) -> (i32, i32) {
    %c0_i32 = arith.constant 0 : i32
    %c0_i32_0 = arith.constant 0 : i32
    %c0_i32_1 = arith.constant 0 : i32
    return %c0_i32, %c0_i32_0 : i32, i32
  }
  func.func @transform_2(%arg0: i32) -> (i32, i32) {
    %c0_i32 = arith.constant 0 : i32
    %c0_i32_0 = arith.constant 0 : i32
    %c0_i32_1 = arith.constant 0 : i32
    return %c0_i32, %c0_i32_0 : i32, i32
  }
  func.func @transform_3(%arg0: i32) -> (i32, i32) {
    %c0_i32 = arith.constant 0 : i32
    %c0_i32_0 = arith.constant 0 : i32
    %c0_i32_1 = arith.constant 0 : i32
    return %c0_i32, %c0_i32_0 : i32, i32
  }
  func.func @transform_4(%arg0: i32) -> (i32, i32) {
    %c0_i32 = arith.constant 0 : i32
    %c0_i32_0 = arith.constant 0 : i32
    %c0_i32_1 = arith.constant 0 : i32
    return %c0_i32, %c0_i32_0 : i32, i32
  }
  func.func @transform_5(%arg0: i32) -> (i32, i32) {
    %c0_i32 = arith.constant 0 : i32
    %c0_i32_0 = arith.constant 0 : i32
    %c0_i32_1 = arith.constant 0 : i32
    return %c0_i32, %c0_i32_0 : i32, i32
  }
  func.func @transform_6(%arg0: i32) -> (i32, i32) {
    %c0_i32 = arith.constant 0 : i32
    %c0_i32_0 = arith.constant 0 : i32
    %c0_i32_1 = arith.constant 0 : i32
    return %c0_i32, %c0_i32_0 : i32, i32
  }
  func.func @transform_7(%arg0: i32) -> (i32, i32) {
    %c0_i32 = arith.constant 0 : i32
    %c0_i32_0 = arith.constant 0 : i32
    return %arg0, %c0_i32 : i32, i32
  }
}

</mosaic_0001>

<bundles_post_ra>
// kernel: tpu_custom_call.1
= control target key start
LH: loop header
LB: loop body
LE: loop exit
PB: predicated region body
PF: predicated region fallthrough
CT: control target
= control target key end

     0   :  { %12 = vsyncpa [#allocation3], 0  ;;  %s3000_s0 = inlined_call_operand.hbm [shape: f32[16,128], index: 0, kind: input, shape index: {}]   ;;  %s3001_s1 = inlined_call_operand.hbm [shape: f32[128,256], index: 1, kind: input, shape index: {}]   ;;  %s3002_s2 = inlined_call_operand.hbm [shape: f32[1,256], index: 2, kind: input, shape index: {}]   ;;  %s3003_s3 = inlined_call_operand.hbm [shape: f32[256,128], index: 3, kind: input, shape index: {}]   ;;  %s3004_s4 = inlined_call_operand.vmem [shape: f32[1,128], index: 4, kind: input, shape index: {}]   ;;  %s3005_s5 = inlined_call_operand.vmem [shape: f32[1,128], index: 5, kind: input, shape index: {}]   ;;  %s3006_s6 = inlined_call_operand.vmem [shape: f32[1,128], index: 6, kind: input, shape index: {}]   ;;  %s3007_s7 = inlined_call_operand.hbm [shape: f32[16,128], index: 7, kind: output, shape index: {}]  }
   0x1   :  { %13 = vsyncpa [#allocation6], 0 }
   0x2   :  { %14 = vsyncpa [#allocation9], 0  ;;  %s33_s26 = sshll.u32 %s3001_s1, 4  ;;  %s34_s26 = int_to_ptr.hbm [resolvable:$true] %s33_s26 }
   0x3   :  { %15 = vsyncpa [#allocation4], 0  ;;  %s1889_s27 = smov [#allocation5]   ;;  %s20_s8 = sshll.u32 %s3000_s0, 4  ;;  %s21_s8 = int_to_ptr.hbm [resolvable:$true] %s20_s8 }
   0x4   :  { %s35_s28 = sshll.u32 %s1889_s27, 4  ;;  %s1890_s9 = smov 256   ;;  %s36_s28 = int_to_ptr.vmem [resolvable:$true] %s35_s28 }
   0x5   :  { %s1891_s10 = smov 16   ;;  %s1892_s11 = smov [#allocation2]  }
   0x6   :  { %41 = dma.hbm_to_vmem [thread:$0]  %s34_s26, 4096, %s36_s28, [#allocation6], %s1890_s9, %s1890_s9, %s1891_s10  }
   0x7   :  { %s22_s12 = sshll.u32 %s1892_s11, 4  ;;  %s1893_s13 = smov 128   ;;  %s23_s12 = int_to_ptr.vmem [resolvable:$true] %s22_s12 }
   0x8   :  { %s1894_s14 = smov 8   ;;  %s47_s16 = sshll.u32 %s3002_s2, 4  ;;  %s48_s16 = int_to_ptr.hbm [resolvable:$true] %s47_s16 }
   0x9   :  { %28 = dma.hbm_to_vmem [thread:$0]  %s21_s8, 256, %s23_s12, [#allocation3], %s1893_s13, %s1893_s13, %s1894_s14  }
   0xa   :  { %s1895_s17 = smov [#allocation7]   ;;  %s57_s20 = sshll.u32 %s3003_s3, 4  ;;  %s58_s20 = int_to_ptr.hbm [resolvable:$true] %s57_s20 }
   0xb   :  { %s49_s0 = sshll.u32 %s1895_s17, 4  ;;  %s1896_s21 = smov [#allocation8]   ;;  %s50_s0 = int_to_ptr.vmem [resolvable:$true] %s49_s0 }
   0xc   :  { %52 = dma.hbm_to_vmem [thread:$0]  %s48_s16, 32, %s50_s0, [#allocation6]  }
   0xd   :  { %s59_s22 = sshll.u32 %s1896_s21, 4  ;;  %s60_s22 = int_to_ptr.vmem [resolvable:$true] %s59_s22 }
   0xe   :  { %65 = dma.hbm_to_vmem [thread:$0]  %s58_s20, 4096, %s60_s22, [#allocation9], %s1893_s13, %s1893_s13, %s1894_s14  }
   0xf   :  { %1881 = dma.done.wait [#allocation3], 256  }
  0x10   :  { %1882 = vsyncadd [#allocation3], 4294967040 }
  0x11   :  { %1883 = dma.done.wait [#allocation6], 4128  }
  0x12   :  { %1884 = vsyncadd [#allocation6], 4294963168 }
  0x13   :  { %1885 = dma.done.wait [#allocation9], 4096  }
  0x14   :  { %1886 = vsyncadd [#allocation9], 4294963200  ;;  %v120_v0 = vld [vmem:[#allocation5 + $0xf0] sm:$0xff]  ;;  %v118_v1 = vld [vmem:[#allocation5 + $0xe0] sm:$0xff]  ;;  %s1898_s26 = smov [#allocation10]   ;;  %s1725_s29 = sshll.u32 %s3007_s7, 4  ;;  %s1726_s29 = int_to_ptr.hbm [resolvable:$true] %s1725_s29 }
  0x15   :  { %v116_v2 = vld [vmem:[#allocation5 + $0xd0] sm:$0xff]  ;;  %v1957_v3 = vand.u32 4294901760, %v120_v0  ;;  %v1959_v4 = vand.u32 4294901760, %v118_v1  ;;  %v114_v6 = vld [vmem:[#allocation5 + $0xc0] sm:$0xff]  ;;  %v121_v59 = vld [vmem:[#allocation5 + $0xf8] sm:$0xff] }
  0x16   :  { %v1961_v5 = vand.u32 4294901760, %v116_v2  ;;  %v112_v7 = vld [vmem:[#allocation5 + $0xb0] sm:$0xff]  ;;  %v110_v8 = vld [vmem:[#allocation5 + $0xa0] sm:$0xff]  ;;  %v1963_v9 = vand.u32 4294901760, %v114_v6 }
  0x17   :  { %v1965_v10 = vand.u32 4294901760, %v112_v7  ;;  %v1967_v11 = vand.u32 4294901760, %v110_v8  ;;  %v108_v12 = vld [vmem:[#allocation5 + $0x90] sm:$0xff]  ;;  %v106_v13 = vld [vmem:[#allocation5 + $0x80] sm:$0xff]  ;;  %129 = vmatpush.msra.mxu0 %v1957_v3  ;;  %v1971_v14 = vsub.f32 %v120_v0, %v1957_v3  ;;  %v1974_v15 = vsub.f32 %v118_v1, %v1959_v4  ;;  %342 = vmatpush.msra.mxu3 %v1957_v3 }
  0x18   :  { %v1978_v16 = vsub.f32 %v116_v2, %v1961_v5  ;;  %v1980_v17 = vand.u32 4294901760, %v108_v12  ;;  %v104_v18 = vld [vmem:[#allocation5 + $0x70] sm:$0xff]  ;;  %v1983_v19 = vsub.f32 %v114_v6, %v1963_v9  ;;  %v1988_v21 = vand.u32 4294901760, %v106_v13  ;;  %v102_v26 = vld [vmem:[#allocation5 + $0x60] sm:$0xff]  ;;  %v119_v2 = vld [vmem:[#allocation5 + $0xe8] sm:$0xff] }
  0x19   :  { %v1986_v20 = vsub.f32 %v112_v7, %v1965_v10  ;;  %131 = vmatpush.msra.mxu0 %v1959_v4  ;;  %284 = vmatpush.msra.mxu2 %v1971_v14  ;;  %v179_v22 = vand.u32 4294901760, %v1971_v14  ;;  %v3024_v23 = vand.u32 4294901760, %v1974_v15  ;;  %v1996_v25 = vsub.f32 %v110_v8, %v1967_v11  ;;  %v100_v36 = vld [vmem:[#allocation5 + $0x50] sm:$0xff]  ;;  %v98_v42 = vld [vmem:[#allocation5 + $0x40] sm:$0xff] }
  0x1a   :  { %v3021_v24 = vand.u32 4294901760, %v1978_v16  ;;  %344 = vmatpush.msra.mxu3 %v1959_v4  ;;  %v3020_v27 = vand.u32 4294901760, %v1983_v19  ;;  %v2000_v28 = vand.u32 4294901760, %v104_v18  ;;  %v2003_v29 = vsub.f32 %v108_v12, %v1980_v17  ;;  %v96_v48 = vld [vmem:[#allocation5 + $0x30] sm:$0xff]  ;;  %v94_v54 = vld [vmem:[#allocation5 + $0x20] sm:$0xff] }
  0x1b   :  { %133 = vmatpush.msra.mxu0 %v1961_v5  ;;  %287 = vmatpush.msra.mxu2 %v1974_v15  ;;  %v180_v30 = vsub.f32 %v1971_v14, %v179_v22  ;;  %v186_v31 = vsub.f32 %v1974_v15, %v3024_v23  ;;  %v3017_v33 = vand.u32 4294901760, %v1986_v20  ;;  %v2018_v34 = vand.u32 4294901760, %v102_v26  ;;  %v92_v61 = vld [vmem:[#allocation5 + $0x10] sm:$0xff]  ;;  %v90_v7 = vld [vmem:[#allocation5] sm:$0xff] }
  0x1c   :  { %v192_v32 = vsub.f32 %v1978_v16, %v3021_v24  ;;  %346 = vmatpush.msra.mxu3 %v1961_v5  ;;  %v2021_v35 = vsub.f32 %v106_v13, %v1988_v21  ;;  %v198_v39 = vsub.f32 %v1983_v19, %v3020_v27  ;;  %v3016_v40 = vand.u32 4294901760, %v1996_v25 }
  0x1d   :  { %135 = vmatpush.msra.mxu0 %v1963_v9  ;;  %v181_v37 = vand.u32 4294901760, %v180_v30  ;;  %290 = vmatpush.msra.mxu2 %v1978_v16  ;;  %v187_v38 = vand.u32 4294901760, %v186_v31  ;;  %v3014_v41 = vand.u32 4294901760, %v2003_v29  ;;  %v204_v44 = vsub.f32 %v1986_v20, %v3017_v33  ;;  %v117_v30 = vld [vmem:[#allocation5 + $0xd8] sm:$0xff] }
  0x1e   :  { %348 = vmatpush.msra.mxu3 %v1963_v9  ;;  %v193_v43 = vand.u32 4294901760, %v192_v32  ;;  %v2035_v45 = vand.u32 4294901760, %v100_v36  ;;  %v2038_v46 = vsub.f32 %v104_v18, %v2000_v28  ;;  %v3013_v47 = vand.u32 4294901760, %v2021_v35 }
  0x1f   :  { %137 = vmatpush.msra.mxu0 %v1965_v10  ;;  %182 = vmatpush.msra.mxu1 %v181_v37  ;;  %v199_v49 = vand.u32 4294901760, %v198_v39  ;;  %v210_v50 = vsub.f32 %v1996_v25, %v3016_v40  ;;  %v2047_v51 = vand.u32 4294901760, %v98_v42  ;;  %v2050_v52 = vsub.f32 %v102_v26, %v2018_v34 }
  0x20   :  { %293 = vmatpush.msra.mxu2 %v1983_v19  ;;  %350 = vmatpush.msra.mxu3 %v1965_v10  ;;  %v216_v53 = vsub.f32 %v2003_v29, %v3014_v41  ;;  %v205_v55 = vand.u32 4294901760, %v204_v44  ;;  %v2058_v56 = vand.u32 4294901760, %v96_v48  ;;  %v3011_v57 = vand.u32 4294901760, %v2038_v46 }
  0x21   :  { %139 = vmatpush.msra.mxu0 %v1967_v11  ;;  %188 = vmatpush.msra.mxu1 %v187_v38  ;;  %v2062_v58 = vsub.f32 %v100_v36, %v2035_v45  ;;  %v222_v60 = vsub.f32 %v2021_v35, %v3013_v47  ;;  %v211_v62 = vand.u32 4294901760, %v210_v50  ;;  %v2070_v63 = vand.u32 4294901760, %v94_v54 }
  0x22   :  { %296 = vmatpush.msra.mxu2 %v1986_v20  ;;  %352 = vmatpush.msra.mxu3 %v1967_v11  ;;  %v3010_v0 = vand.u32 4294901760, %v2050_v52  ;;  %v2074_v1 = vsub.f32 %v98_v42, %v2047_v51  ;;  %v217_v6 = vand.u32 4294901760, %v216_v53  ;;  %v2078_v8 = vand.u32 4294901760, %v121_v59  ;;  %v115_v42 = vld [vmem:[#allocation5 + $0xc8] sm:$0xff] }
  0x23   :  { %141 = vmatpush.msra.mxu0 %v1980_v17  ;;  %194 = vmatpush.msra.mxu1 %v193_v43  ;;  %v228_v12 = vsub.f32 %v2038_v46, %v3011_v57  ;;  %v2084_v13 = vand.u32 4294901760, %v92_v61  ;;  %v3009_v18 = vand.u32 4294901760, %v2062_v58  ;;  %v2088_v26 = vsub.f32 %v96_v48, %v2058_v56  ;;  %v109_v57 = vld [vmem:[#allocation5 + $0x98] sm:$0xff] }
  0x24   :  { %299 = vmatpush.msra.mxu2 %v1996_v25  ;;  %354 = vmatpush.msra.mxu3 %v1980_v17  ;;  %v223_v31 = vand.u32 4294901760, %v222_v60  ;;  %v2092_v32 = vand.u32 4294901760, %v119_v2  ;;  %v234_v36 = vsub.f32 %v2050_v52, %v3010_v0  ;;  %v2098_v37 = vand.u32 4294901760, %v90_v7 }
  0x25   :  { %143 = vmatpush.msra.mxu0 %v1988_v21  ;;  %200 = vmatpush.msra.mxu1 %v199_v49  ;;  %v3008_v38 = vand.u32 4294901760, %v2074_v1  ;;  %v2102_v39 = vsub.f32 %v94_v54, %v2070_v63  ;;  %v2107_v43 = vsub.f32 %v121_v59, %v2078_v8  ;;  %v2109_v44 = vand.u32 4294901760, %v117_v30  ;;  %v113_v59 = vld [vmem:[#allocation5 + $0xb8] sm:$0xff] }
  0x26   :  { %302 = vmatpush.msra.mxu2 %v2003_v29  ;;  %356 = vmatpush.msra.mxu3 %v1988_v21  ;;  %3036 = vst [vmem:[#allocation15_spill] sm:$0xff] %v2092_v32  ;;  %v229_v48 = vand.u32 4294901760, %v228_v12  ;;  %v240_v49 = vsub.f32 %v2062_v58, %v3009_v18  ;;  %v3012_v50 = vand.u32 4294901760, %v2088_v26  ;;  %v2117_v53 = vsub.f32 %v92_v61, %v2084_v13 }
  0x27   :  { %145 = vmatpush.msra.mxu0 %v2000_v28  ;;  %206 = vmatpush.msra.mxu1 %v205_v55  ;;  %3037 = vst [vmem:[#allocation16_spill] sm:$0xff] %v2098_v37  ;;  %v2122_v54 = vsub.f32 %v119_v2, %v2092_v32  ;;  %v2124_v55 = vand.u32 4294901760, %v115_v42  ;;  %v235_v60 = vand.u32 4294901760, %v234_v36  ;;  %v3015_v61 = vand.u32 4294901760, %v2102_v39 }
  0x28   :  { %305 = vmatpush.msra.mxu2 %v2021_v35  ;;  %358 = vmatpush.msra.mxu3 %v2000_v28  ;;  %v3018_v2 = vand.u32 4294901760, %v2107_v43  ;;  %v2138_v12 = vsub.f32 %v117_v30, %v2109_v44  ;;  %v241_v36 = vand.u32 4294901760, %v240_v49  ;;  %v2145_v18 = vand.u32 4294901760, %v113_v59 }
  0x29   :  { %147 = vmatpush.msra.mxu0 %v2018_v34  ;;  %212 = vmatpush.msra.mxu1 %v211_v62  ;;  %v246_v62 = vsub.f32 %v2074_v1, %v3008_v38  ;;  %v252_v38 = vsub.f32 %v2088_v26, %v3012_v50  ;;  %v3022_v30 = vand.u32 4294901760, %v2122_v54  ;;  %v2151_v0 = vsub.f32 %v115_v42, %v2124_v55 }
  0x2a   :  { %308 = vmatpush.msra.mxu2 %v2038_v46  ;;  %360 = vmatpush.msra.mxu3 %v2018_v34  ;;  %v258_v49 = vsub.f32 %v2102_v39, %v3015_v61  ;;  %v552_v42 = vsub.f32 %v2107_v43, %v3018_v2  ;;  %v3025_v41 = vand.u32 4294901760, %v2138_v12  ;;  %v2171_v40 = vsub.f32 %v113_v59, %v2145_v18 }
  0x2b   :  { %149 = vmatpush.msra.mxu0 %v2035_v45  ;;  %218 = vmatpush.msra.mxu1 %v217_v6  ;;  %v2132_v6 = vsub.f32 %v90_v7, %v2098_v37  ;;  %v3019_v7 = vand.u32 4294901760, %v2117_v53  ;;  %v2173_v33 = vand.u32 4294901760, %v109_v57  ;;  %v558_v2 = vsub.f32 %v2122_v54, %v3022_v30 }
  0x2c   :  { %311 = vmatpush.msra.mxu2 %v2050_v52  ;;  %362 = vmatpush.msra.mxu3 %v2035_v45  ;;  %v553_v30 = vand.u32 4294901760, %v552_v42  ;;  %v3038_v14 = vand.u32 4294901760, %v1974_v15  ;;  %v3039_v42 = vand.u32 4294901760, %v2151_v0  ;;  %v3040_v15 = vand.u32 4294901760, %v1978_v16 }
  0x2d   :  { %151 = vmatpush.msra.mxu0 %v2047_v51  ;;  %224 = vmatpush.msra.mxu1 %v223_v31  ;;  %v111_v31 = vld [vmem:[#allocation5 + $0xa8] sm:$0xff]  ;;  %v3023_v50 = vand.u32 4294901760, %v2132_v6  ;;  %v264_v61 = vsub.f32 %v2117_v53, %v3019_v7  ;;  %v259_v7 = vand.u32 4294901760, %v258_v49  ;;  %v105_v49 = vld [vmem:[#allocation5 + $0x78] sm:$0xff]  ;;  %v3042_v16 = vand.u32 4294901760, %v1983_v19 }
  0x2e   :  { %314 = vmatpush.msra.mxu2 %v2062_v58  ;;  %364 = vmatpush.msra.mxu3 %v2047_v51  ;;  %v2158_v47 = vand.u32 4294901760, %v111_v31  ;;  %v3044_v19 = vand.u32 4294901760, %v1986_v20  ;;  %v97_v20 = vld [vmem:[#allocation5 + $0x38] sm:$0xff] }
  0x2f   :  { %153 = vmatpush.msra.mxu0 %v2058_v56  ;;  %230 = vmatpush.msra.mxu1 %v229_v48  ;;  %v247_v48 = vand.u32 4294901760, %v246_v62  ;;  %v253_v62 = vand.u32 4294901760, %v252_v38  ;;  %v88_v38 = vld [vmem:[#allocation2] sm:$0xff]  ;;  %v270_v59 = vsub.f32 %v2132_v6, %v3023_v50  ;;  %v2199_v50 = vsub.f32 %v109_v57, %v2173_v33 }
  0x30   :  { %317 = vmatpush.msra.mxu2 %v2074_v1  ;;  %366 = vmatpush.msra.mxu3 %v2058_v56  ;;  %v2186_v27 = vsub.f32 %v111_v31, %v2158_v47  ;;  %v2201_v23 = vand.u32 4294901760, %v88_v38  ;;  %v2211_v31 = vand.u32 4294901760, %v105_v49 }
  0x31   :  { %155 = vmatpush.msra.mxu0 %v2070_v63  ;;  %236 = vmatpush.msra.mxu1 %v235_v60  ;;  %v107_v60 = vld [vmem:[#allocation5 + $0x88] sm:$0xff] }
  0x32   :  { %320 = vmatpush.msra.mxu2 %v2088_v26  ;;  %368 = vmatpush.msra.mxu3 %v2070_v63  ;;  %v2188_v24 = vand.u32 4294901760, %v107_v60  ;;  %v2224_v57 = vsub.f32 %v88_v38, %v2201_v23 }
  0x33   :  { %157 = vmatpush.msra.mxu0 %v2084_v13  ;;  %242 = vmatpush.msra.mxu1 %v241_v36  ;;  %v265_v36 = vand.u32 4294901760, %v264_v61  ;;  %v103_v61 = vld [vmem:[#allocation5 + $0x68] sm:$0xff] }
  0x34   :  { %323 = vmatpush.msra.mxu2 %v2102_v39  ;;  %370 = vmatpush.msra.mxu3 %v2084_v13 }
  0x35   :  { %159 = vmatpush.msra.mxu0 %v2098_v37  ;;  %248 = vmatpush.msra.mxu1 %v247_v48  ;;  %v564_v48 = vsub.f32 %v2138_v12, %v3025_v41  ;;  %v271_v41 = vand.u32 4294901760, %v270_v59 }
  0x36   :  { %326 = vmatpush.msra.mxu2 %v2117_v53  ;;  %372 = vmatpush.msra.mxu3 %v2098_v37  ;;  %v2214_v37 = vsub.f32 %v107_v60, %v2188_v24  ;;  %v2226_v60 = vand.u32 4294901760, %v103_v61 }
  0x37   :  { %389 = vmatpush.msrb.mxu0 %v179_v22  ;;  %254 = vmatpush.msra.mxu1 %v253_v62  ;;  %v559_v22 = vand.u32 4294901760, %v558_v2  ;;  %v570_v62 = vsub.f32 %v2151_v0, %v3039_v42  ;;  %v565_v2 = vand.u32 4294901760, %v564_v48  ;;  %v99_v42 = vld [vmem:[#allocation5 + $0x48] sm:$0xff] }
  0x38   :  { %329 = vmatpush.msra.mxu2 %v2132_v6  ;;  %554 = vmatpush.msrb.mxu3 %v553_v30 }
  0x39   :  { %393 = vmatpush.msrb.mxu0 %v3038_v14  ;;  %260 = vmatpush.msra.mxu1 %v259_v7  ;;  %v101_v14 = vld [vmem:[#allocation5 + $0x58] sm:$0xff]  ;;  %v3041_v7 = vand.u32 4294901760, %v2171_v40  ;;  %v571_v30 = vand.u32 4294901760, %v570_v62 }
  0x3a   :  { %501 = vmatpush.msrb.mxu2 %v2078_v8  ;;  %560 = vmatpush.msrb.mxu3 %v559_v22  ;;  %v2238_v38 = vand.u32 4294901760, %v101_v14  ;;  %v3045_v22 = vand.u32 4294901760, %v2199_v50 }
  0x3b   :  { %397 = vmatpush.msrb.mxu0 %v3040_v15  ;;  %266 = vmatpush.msra.mxu1 %v265_v36  ;;  %v576_v59 = vsub.f32 %v2171_v40, %v3041_v7  ;;  %v3043_v36 = vand.u32 4294901760, %v2186_v27  ;;  %v3029_v15 = vand.u32 4294901760, %v2214_v37  ;;  %v2236_v7 = vsub.f32 %v105_v49, %v2211_v31 }
  0x3c   :  { %503 = vmatpush.msrb.mxu2 %v2092_v32  ;;  %v89_v32 = vld [vmem:[#allocation2 + $0x8] sm:$0xff]  ;;  %566 = vmatpush.msrb.mxu3 %v565_v2  ;;  %v588_v62 = vsub.f32 %v2199_v50, %v3045_v22  ;;  %v2248_v49 = vand.u32 4294901760, %v2224_v57  ;;  %v95_v22 = vld [vmem:[#allocation5 + $0x28] sm:$0xff] }
  0x3d   :  { %401 = vmatpush.msrb.mxu0 %v3042_v16  ;;  %272 = vmatpush.msra.mxu1 %v271_v41  ;;  %v582_v48 = vsub.f32 %v2186_v27, %v3043_v36  ;;  %v577_v41 = vand.u32 4294901760, %v576_v59  ;;  %v2251_v16 = vsub.f32 %v103_v61, %v2226_v60  ;;  %v3046_v36 = vand.u32 4294901760, %v1996_v25 }
  0x3e   :  { %505 = vmatpush.msrb.mxu2 %v2109_v44  ;;  %v2258_v2 = vand.u32 4294901760, %v89_v32  ;;  %572 = vmatpush.msrb.mxu3 %v571_v30  ;;  %v3030_v61 = vand.u32 4294901760, %v2236_v7  ;;  %v2266_v25 = vsub.f32 %v101_v14, %v2238_v38  ;;  %v589_v30 = vand.u32 4294901760, %v588_v62 }
  0x3f   :  { %405 = vmatpush.msrb.mxu0 %v3044_v19  ;;  %460 = vmatpush.msrb.mxu1 %v1957_v3  ;;  %v2256_v3 = vand.u32 4294901760, %v99_v42  ;;  %v583_v59 = vand.u32 4294901760, %v582_v48  ;;  %v594_v19 = vsub.f32 %v2214_v37, %v3029_v15  ;;  %v163_v48 = vsub.f32 %v2224_v57, %v2248_v49 }
  0x40   :  { %507 = vmatpush.msrb.mxu2 %v2124_v55  ;;  %578 = vmatpush.msrb.mxu3 %v577_v41  ;;  %v2275_v15 = vand.u32 4294901760, %v97_v20  ;;  %v3048_v14 = vand.u32 4294901760, %v2021_v35  ;;  %v93_v41 = vld [vmem:[#allocation5 + $0x18] sm:$0xff]  ;;  %v611_v35 = vand.u32 4294901760, %v2266_v25 }
  0x41   :  { %409 = vmatpush.msrb.mxu0 %v3046_v36  ;;  %462 = vmatpush.msrb.mxu1 %v1959_v4  ;;  %v3047_v4 = vand.u32 4294901760, %v2003_v29  ;;  %v605_v36 = vand.u32 4294901760, %v2251_v16  ;;  %v2281_v29 = vsub.f32 %v99_v42, %v2256_v3  ;;  %v595_v62 = vand.u32 4294901760, %v594_v19 }
  0x42   :  { %509 = vmatpush.msrb.mxu2 %v2145_v18  ;;  %584 = vmatpush.msrb.mxu3 %v583_v59  ;;  %v2303_v59 = vsub.f32 %v97_v20, %v2275_v15  ;;  %v2305_v19 = vand.u32 4294901760, %v93_v41  ;;  %v612_v20 = vsub.f32 %v2266_v25, %v611_v35 }
  0x43   :  { %413 = vmatpush.msrb.mxu0 %v3047_v4  ;;  %464 = vmatpush.msrb.mxu1 %v1961_v5  ;;  %v2284_v5 = vsub.f32 %v89_v32, %v2258_v2  ;;  %v600_v4 = vsub.f32 %v2236_v7, %v3030_v61  ;;  %v2297_v32 = vand.u32 4294901760, %v163_v48  ;;  %v606_v42 = vsub.f32 %v2251_v16, %v605_v36  ;;  %v91_v61 = vld [vmem:[#allocation5 + $0x8] sm:$0xff] }
  0x44   :  { %511 = vmatpush.msrb.mxu2 %v2158_v47  ;;  %590 = vmatpush.msrb.mxu3 %v589_v30 }
  0x45   :  { %417 = vmatpush.msrb.mxu0 %v3048_v14  ;;  %466 = vmatpush.msrb.mxu1 %v1963_v9  ;;  %v2291_v14 = vand.u32 4294901760, %v95_v22  ;;  %v3049_v9 = vand.u32 4294901760, %v2038_v46  ;;  %v3050_v46 = vand.u32 4294901760, %v2050_v52  ;;  %v2312_v30 = vand.u32 4294901760, %v2284_v5 }
  0x46   :  { %513 = vmatpush.msrb.mxu2 %v2173_v33  ;;  %596 = vmatpush.msrb.mxu3 %v595_v62  ;;  %v601_v48 = vand.u32 4294901760, %v600_v4  ;;  %v3051_v52 = vand.u32 4294901760, %v2062_v58  ;;  %v607_v62 = vand.u32 4294901760, %v606_v42  ;;  %v623_v4 = vand.u32 4294901760, %v2303_v59 }
  0x47   :  { %421 = vmatpush.msrb.mxu0 %v3049_v9  ;;  %468 = vmatpush.msrb.mxu1 %v1965_v10  ;;  %v617_v10 = vand.u32 4294901760, %v2281_v29  ;;  %v2319_v9 = vsub.f32 %v95_v22, %v2291_v14  ;;  %v3052_v22 = vand.u32 4294901760, %v2074_v1  ;;  %v171_v58 = vsub.f32 %v2284_v5, %v2312_v30 }
  0x48   :  { %515 = vmatpush.msrb.mxu2 %v2188_v24  ;;  %165 = vmatmul.f32.vlgmr.msra.gmra.mxu0 %v2297_v32  ;;  %v613_v42 = vand.u32 4294901760, %v612_v20  ;;  %v624_v1 = vsub.f32 %v2303_v59, %v623_v4  ;;  %v3054_v20 = vand.u32 4294901760, %v2102_v39 }
  0x49   :  { %425 = vmatpush.msrb.mxu0 %v3050_v46  ;;  %470 = vmatpush.msrb.mxu1 %v1967_v11  ;;  %v2324_v11 = vand.u32 4294901760, %v91_v61  ;;  %v2330_v46 = vsub.f32 %v93_v41, %v2305_v19  ;;  %v3053_v41 = vand.u32 4294901760, %v2088_v26 }
  0x4a   :  { %517 = vmatpush.msrb.mxu2 %v2211_v31  ;;  %602 = vmatpush.msrb.mxu3 %v601_v48 }
  0x4b   :  { %429 = vmatpush.msrb.mxu0 %v3051_v52  ;;  %472 = vmatpush.msrb.mxu1 %v1980_v17  ;;  %v618_v17 = vsub.f32 %v2281_v29, %v617_v10  ;;  %v629_v52 = vand.u32 4294901760, %v2319_v9  ;;  %v635_v48 = vand.u32 4294901760, %v2330_v46 }
  0x4c   :  { %519 = vmatpush.msrb.mxu2 %v2226_v60  ;;  %274 = vmatmul.f32.vlgmr.msra.gmra.mxu1 %v2201_v23 }
  0x4d   :  { %433 = vmatpush.msrb.mxu0 %v3052_v22  ;;  %474 = vmatpush.msrb.mxu1 %v1988_v21  ;;  %v2346_v21 = vsub.f32 %v91_v61, %v2324_v11  ;;  %v619_v26 = vand.u32 4294901760, %v618_v17  ;;  %v2356_v22 = vand.u32 4294901760, %v171_v58  ;;  %v3055_v61 = vand.u32 4294901760, %v2117_v53 }
  0x4e   :  { %521 = vmatpush.msrb.mxu2 %v2238_v38  ;;  %608 = vmatpush.msrb.mxu3 %v607_v62  ;;  %v636_v62 = vsub.f32 %v2330_v46, %v635_v48  ;;  %v3056_v17 = vand.u32 4294901760, %v2132_v6  ;;  %v3057_v6 = vand.u32 4294901760, %v2107_v43 }
  0x4f   :  { %437 = vmatpush.msrb.mxu0 %v3053_v41  ;;  %476 = vmatpush.msrb.mxu1 %v2000_v28  ;;  %v630_v28 = vsub.f32 %v2319_v9, %v629_v52  ;;  %v641_v39 = vand.u32 4294901760, %v2346_v21 }
  0x50   :  { %523 = vmatpush.msrb.mxu2 %v2256_v3  ;;  %614 = vmatpush.msrb.mxu3 %v613_v42  ;;  %v637_v58 = vand.u32 4294901760, %v636_v62  ;;  %v3063_v42 = vand.u32 4294901760, %v2171_v40 }
  0x51   :  { %441 = vmatpush.msrb.mxu0 %v3054_v20  ;;  %478 = vmatpush.msrb.mxu1 %v2018_v34  ;;  %v625_v34 = vand.u32 4294901760, %v624_v1  ;;  %v631_v53 = vand.u32 4294901760, %v630_v28  ;;  %v881_v28 = vld [vmem:[#allocation8 + $0x28] sm:$0xff] }
  0x52   :  { %332 = vmatmul.f32.vlgmr.msra.gmra.mxu2 %v2224_v57  ;;  %620 = vmatpush.msrb.mxu3 %v619_v26 }
  0x53   :  { %445 = vmatpush.msrb.mxu0 %v3055_v61  ;;  %480 = vmatpush.msrb.mxu1 %v2035_v45  ;;  %v642_v45 = vsub.f32 %v2346_v21, %v641_v39 }
  0x54   :  { %525 = vmatpush.msrb.mxu2 %v2275_v15  ;;  %173 = vmatmul.f32.gmra.mxu0 %v2356_v22 }
  0x55   :  { %376 = vmatmul.f32.vlgmr.msra.gmra.mxu3 %v2248_v49  ;;  %449 = vmatpush.msrb.mxu0 %v3056_v17  ;;  %v880_v17 = vld [vmem:[#allocation8 + $0x20] sm:$0xff] }
  0x56   :  { %482 = vmatpush.msrb.mxu1 %v2047_v51  ;;  %527 = vmatpush.msrb.mxu2 %v2291_v14  ;;  %v643_v51 = vand.u32 4294901760, %v642_v45  ;;  %v2554_v45 = vand.u32 4294901760, %v881_v28 }
  0x57   :  { %626 = vmatpush.msrb.mxu3 %v625_v34  ;;  %278 = vmatmul.f32.gmra.mxu1 %v2258_v2 }
  0x58   :  { %656 = vmatpush.msra.mxu0 %v2107_v43  ;;  %484 = vmatpush.msrb.mxu1 %v2058_v56  ;;  %v3058_v56 = vand.u32 4294901760, %v2122_v54  ;;  %v3061_v43 = vld [vmem:[#allocation15_spill] sm:$0xff] }
  0x59   :  { %529 = vmatpush.msrb.mxu2 %v2305_v19  ;;  %632 = vmatpush.msrb.mxu3 %v631_v53 }
  0x5a   :  { %659 = vmatpush.msra.mxu0 %v2122_v54  ;;  %486 = vmatpush.msrb.mxu1 %v2070_v63  ;;  %v3059_v63 = vld [vmem:[#allocation16_spill] sm:$0xff]  ;;  %v3062_v54 = vand.u32 4294901760, %v2151_v0 }
  0x5b   :  { %531 = vmatpush.msrb.mxu2 %v2324_v11  ;;  %638 = vmatpush.msrb.mxu3 %v637_v58 }
  0x5c   :  { %337 = vmatmul.f32.gmra.mxu2 %v2284_v5  ;;  %662 = vmatpush.msra.mxu0 %v2138_v12 }
  0x5d   :  { %761 = vmatpush.msra.mxu2 %v3057_v6  ;;  %488 = vmatpush.msrb.mxu1 %v2084_v13  ;;  %v3060_v13 = vand.u32 4294901760, %v2138_v12  ;;  %v887_v12 = vld [vmem:[#allocation8 + $0x58] sm:$0xff] }
  0x5e   :  { %644 = vmatpush.msrb.mxu3 %v643_v51  ;;  %451 = vmatmul.f32.vlgmr.msrb.gmra.mxu0 %v2201_v23 }
  0x5f   :  { %382 = vmatmul.f32.gmra.mxu3 %v2312_v30  ;;  %665 = vmatpush.msra.mxu0 %v2151_v0  ;;  %v891_v0 = vld [vmem:[#allocation8 + $0x78] sm:$0xff] }
  0x60   :  { %765 = vmatpush.msra.mxu2 %v3058_v56  ;;  %832 = vmatpush.msra.mxu3 %v2078_v8  ;;  %v2566_v56 = vand.u32 4294901760, %v880_v17 }
  0x61   :  { %490 = vmatpush.msrb.mxu1 %v3059_v63  ;;  %668 = vmatpush.msra.mxu0 %v2171_v40  ;;  %v3065_v40 = vand.u32 4294901760, %v2199_v50 }
  0x62   :  { %492 = vmatmul.f32.vlgmr.msrb.gmra.mxu1 %v2201_v23  ;;  %769 = vmatpush.msra.mxu2 %v3060_v13  ;;  %v878_v13 = vld [vmem:[#allocation8 + $0x10] sm:$0xff] }
  0x63   :  { %714 = vmatpush.msra.mxu1 %v2078_v8  ;;  %834 = vmatpush.msra.mxu3 %v3061_v43  ;;  %v3064_v8 = vand.u32 4294901760, %v2186_v27 }
  0x64   :  { %671 = vmatpush.msra.mxu0 %v2186_v27  ;;  %773 = vmatpush.msra.mxu2 %v3062_v54  ;;  %v3066_v27 = vand.u32 4294901760, %v2214_v37 }
  0x65   :  { %716 = vmatpush.msra.mxu1 %v3061_v43  ;;  %836 = vmatpush.msra.mxu3 %v2109_v44 }
  0x66   :  { %674 = vmatpush.msra.mxu0 %v2199_v50  ;;  %777 = vmatpush.msra.mxu2 %v3063_v42  ;;  %v888_v50 = vld [vmem:[#allocation8 + $0x60] sm:$0xff]  ;;  %v2576_v42 = vsub.f32 %v881_v28, %v2554_v45 }
  0x67   :  { %718 = vmatpush.msra.mxu1 %v2109_v44  ;;  %838 = vmatpush.msra.mxu3 %v2124_v55  ;;  %v890_v44 = vld [vmem:[#allocation8 + $0x70] sm:$0xff] }
  0x68   :  { %455 = vmatmul.f32.gmra.mxu0 %v2258_v2  ;;  %781 = vmatpush.msra.mxu2 %v3064_v8 }
  0x69   :  { %677 = vmatpush.msra.mxu0 %v2214_v37  ;;  %720 = vmatpush.msra.mxu1 %v2124_v55  ;;  %v889_v37 = vld [vmem:[#allocation8 + $0x68] sm:$0xff] }
  0x6a   :  { %840 = vmatpush.msra.mxu3 %v2145_v18  ;;  %496 = vmatmul.f32.gmra.mxu1 %v2258_v2  ;;  %v2456_v55 = vand.u32 4294901760, %v889_v37 }
  0x6b   :  { %680 = vmatpush.msra.mxu0 %v2236_v7  ;;  %722 = vmatpush.msra.mxu1 %v2145_v18  ;;  %v3067_v18 = vand.u32 4294901760, %v2236_v7  ;;  %v2466_v7 = vand.u32 4294901760, %v888_v50 }
  0x6c   :  { %785 = vmatpush.msra.mxu2 %v3065_v40  ;;  %842 = vmatpush.msra.mxu3 %v2158_v47 }
  0x6d   :  { %683 = vmatpush.msra.mxu0 %v2251_v16  ;;  %724 = vmatpush.msra.mxu1 %v2158_v47  ;;  %v2439_v47 = vand.u32 4294901760, %v891_v0  ;;  %v886_v16 = vld [vmem:[#allocation8 + $0x50] sm:$0xff] }
  0x6e   :  { %789 = vmatpush.msra.mxu2 %v3066_v27  ;;  %844 = vmatpush.msra.mxu3 %v2173_v33  ;;  %v877_v27 = vld [vmem:[#allocation8 + $0x8] sm:$0xff] }
  0x6f   :  { %537 = vmatmul.f32.vlgmr.msrb.gmra.mxu2 %v2297_v32  ;;  %686 = vmatpush.msra.mxu0 %v2266_v25  ;;  %v2475_v25 = vsub.f32 %v889_v37, %v2456_v55  ;;  %v2487_v32 = vsub.f32 %v888_v50, %v2466_v7  ;;  %v2590_v37 = vand.u32 4294901760, %v878_v13 }
  0x70   :  { %726 = vmatpush.msra.mxu1 %v2173_v33  ;;  %793 = vmatpush.msra.mxu2 %v3067_v18  ;;  %v2446_v33 = vand.u32 4294901760, %v890_v44 }
  0x71   :  { %846 = vmatpush.msra.mxu3 %v2188_v24  ;;  %689 = vmatpush.msra.mxu0 %v2281_v29  ;;  %v885_v29 = vld [vmem:[#allocation8 + $0x48] sm:$0xff] }
  0x72   :  { %646 = vmatmul.f32.vlgmr.msrb.gmra.mxu3 %v2201_v23  ;;  %728 = vmatpush.msra.mxu1 %v2188_v24  ;;  %v2454_v24 = vsub.f32 %v891_v0, %v2439_v47 }
  0x73   :  { %797 = vmatpush.msra.mxu2 %v605_v36  ;;  %848 = vmatpush.msra.mxu3 %v2211_v31  ;;  %v2477_v36 = vand.u32 4294901760, %v887_v12 }
  0x74   :  { %692 = vmatpush.msra.mxu0 %v2303_v59  ;;  %730 = vmatpush.msra.mxu1 %v2211_v31  ;;  %v2464_v31 = vsub.f32 %v890_v44, %v2446_v33  ;;  %v2492_v59 = vand.u32 4294901760, %v885_v29  ;;  %v2588_v44 = vsub.f32 %v880_v17, %v2566_v56 }
  0x75   :  { %801 = vmatpush.msra.mxu2 %v611_v35  ;;  %850 = vmatpush.msra.mxu3 %v2226_v60  ;;  %v2481_v35 = vand.u32 4294901760, %v886_v16  ;;  %v2501_v41 = vsub.f32 %v887_v12, %v2477_v36  ;;  %v1023_v12 = vand.u32 4294901760, %v2576_v42 }
  0x76   :  { %695 = vmatpush.msra.mxu0 %v2319_v9  ;;  %732 = vmatpush.msra.mxu1 %v2226_v60  ;;  %v963_v60 = vand.u32 4294901760, %v2454_v24 }
  0x77   :  { %805 = vmatpush.msra.mxu2 %v617_v10  ;;  %852 = vmatpush.msra.mxu3 %v2238_v38  ;;  %v884_v10 = vld [vmem:[#allocation8 + $0x40] sm:$0xff]  ;;  %v2507_v9 = vsub.f32 %v886_v16, %v2481_v35  ;;  %v987_v26 = vand.u32 4294901760, %v2501_v41 }
  0x78   :  { %545 = vmatmul.f32.gmra.mxu2 %v2356_v22  ;;  %698 = vmatpush.msra.mxu0 %v2330_v46  ;;  %v2515_v1 = vand.u32 4294901760, %v884_v10  ;;  %v2521_v46 = vsub.f32 %v885_v29, %v2492_v59  ;;  %v2602_v29 = vand.u32 4294901760, %v877_v27 }
  0x79   :  { %734 = vmatpush.msra.mxu1 %v2238_v38  ;;  %809 = vmatpush.msra.mxu2 %v623_v4  ;;  %v969_v38 = vand.u32 4294901760, %v2464_v31  ;;  %v975_v4 = vand.u32 4294901760, %v2475_v25 }
  0x7a   :  { %854 = vmatpush.msra.mxu3 %v2256_v3  ;;  %701 = vmatpush.msra.mxu0 %v2346_v21  ;;  %v993_v21 = vand.u32 4294901760, %v2507_v9  ;;  %v999_v62 = vand.u32 4294901760, %v2521_v46 }
  0x7b   :  { %650 = vmatmul.f32.gmra.mxu3 %v2258_v2  ;;  %736 = vmatpush.msra.mxu1 %v2256_v3  ;;  %v964_v3 = vsub.f32 %v2454_v24, %v963_v60  ;;  %v976_v20 = vsub.f32 %v2475_v25, %v975_v4 }
  0x7c   :  { %813 = vmatpush.msra.mxu2 %v629_v52  ;;  %856 = vmatpush.msra.mxu3 %v2275_v15  ;;  %v981_v52 = vand.u32 4294901760, %v2487_v32  ;;  %v1000_v63 = vsub.f32 %v2521_v46, %v999_v62 }
  0x7d   :  { %704 = vmatmul.f32.vlgmr.msra.gmra.mxu0 %v2224_v57  ;;  %738 = vmatpush.msra.mxu1 %v2275_v15  ;;  %v883_v57 = vld [vmem:[#allocation8 + $0x38] sm:$0xff]  ;;  %v970_v15 = vsub.f32 %v2464_v31, %v969_v38 }
  0x7e   :  { %817 = vmatpush.msra.mxu2 %v635_v48  ;;  %858 = vmatpush.msra.mxu3 %v2291_v14  ;;  %v882_v48 = vld [vmem:[#allocation8 + $0x30] sm:$0xff]  ;;  %v2529_v22 = vand.u32 4294901760, %v883_v57  ;;  %v982_v61 = vsub.f32 %v2487_v32, %v981_v52  ;;  %v1001_v50 = vand.u32 4294901760, %v1000_v63 }
  0x7f   :  { %740 = vmatpush.msra.mxu1 %v2291_v14  ;;  %913 = vmatpush.msrb.mxu0 %v2439_v47  ;;  %v965_v14 = vand.u32 4294901760, %v964_v3  ;;  %v2542_v34 = vand.u32 4294901760, %v882_v48  ;;  %v1029_v3 = vand.u32 4294901760, %v2588_v44 }
  0x80   :  { %821 = vmatpush.msra.mxu2 %v641_v39  ;;  %860 = vmatpush.msra.mxu3 %v2305_v19  ;;  %v2540_v39 = vsub.f32 %v884_v10, %v2515_v1  ;;  %v2552_v53 = vsub.f32 %v883_v57, %v2529_v22  ;;  %v983_v58 = vand.u32 4294901760, %v982_v61  ;;  %v2612_v57 = vsub.f32 %v878_v13, %v2590_v37 }
  0x81   :  { %823 = vmatmul.f32.vlgmr.msra.gmra.mxu2 %v2201_v23  ;;  %742 = vmatpush.msra.mxu1 %v2305_v19  ;;  %v971_v19 = vand.u32 4294901760, %v970_v15  ;;  %v2563_v6 = vsub.f32 %v882_v48, %v2542_v34  ;;  %v1024_v48 = vsub.f32 %v2576_v42, %v1023_v12 }
  0x82   :  { %862 = vmatpush.msra.mxu3 %v2324_v11  ;;  %915 = vmatpush.msrb.mxu0 %v2446_v33  ;;  %v1005_v51 = vand.u32 4294901760, %v2540_v39  ;;  %v1011_v54 = vand.u32 4294901760, %v2552_v53  ;;  %v1041_v61 = vand.u32 4294901760, %v2612_v57 }
  0x83   :  { %864 = vmatmul.f32.vlgmr.msra.gmra.mxu3 %v2201_v23  ;;  %744 = vmatpush.msra.mxu1 %v2324_v11  ;;  %v977_v23 = vand.u32 4294901760, %v976_v20  ;;  %v988_v11 = vsub.f32 %v2501_v41, %v987_v26  ;;  %v1017_v18 = vand.u32 4294901760, %v2563_v6  ;;  %v2622_v20 = vsub.f32 %v877_v27, %v2602_v29 }
  0x84   :  { %748 = vmatmul.f32.vlgmr.msra.gmra.mxu1 %v2248_v49  ;;  %917 = vmatpush.msrb.mxu0 %v2456_v55  ;;  %v994_v49 = vsub.f32 %v2507_v9, %v993_v21  ;;  %v1006_v0 = vsub.f32 %v2540_v39, %v1005_v51  ;;  %v1025_v17 = vand.u32 4294901760, %v1024_v48 }
  0x85   :  { %709 = vmatmul.f32.gmra.mxu0 %v2284_v5  ;;  %966 = vmatpush.msrb.mxu1 %v965_v14  ;;  %v879_v5 = vld [vmem:[#allocation8 + $0x18] sm:$0xff]  ;;  %v989_v43 = vand.u32 4294901760, %v988_v11  ;;  %v1018_v10 = vsub.f32 %v2563_v6, %v1017_v18  ;;  %v1047_v11 = vand.u32 4294901760, %v2622_v20 }
  0x86   :  { %919 = vmatpush.msrb.mxu0 %v2466_v7  ;;  %1126 = vmatpush.msrb.mxu3 %v2439_v47  ;;  %v2578_v8 = vand.u32 4294901760, %v879_v5  ;;  %v995_v40 = vand.u32 4294901760, %v994_v49 }
  0x87   :  { %972 = vmatpush.msrb.mxu1 %v971_v19  ;;  %1068 = vmatpush.msrb.mxu2 %v2454_v24  ;;  %v1019_v28 = vand.u32 4294901760, %v1018_v10  ;;  %v1030_v19 = vsub.f32 %v2588_v44, %v1029_v3  ;;  %v1048_v63 = vsub.f32 %v2622_v20, %v1047_v11  ;;  %v907_v24 = vld [vmem:[#allocation8 + $0xf8] sm:$0xff] }
  0x88   :  { %921 = vmatpush.msrb.mxu0 %v2477_v36  ;;  %1128 = vmatpush.msrb.mxu3 %v2446_v33  ;;  %v2600_v16 = vsub.f32 %v879_v5, %v2578_v8  ;;  %v1042_v5 = vsub.f32 %v2612_v57, %v1041_v61 }
  0x89   :  { %827 = vmatmul.f32.gmra.mxu2 %v2258_v2  ;;  %978 = vmatpush.msrb.mxu1 %v977_v23  ;;  %v1031_v49 = vand.u32 4294901760, %v1030_v19 }
  0x8a   :  { %923 = vmatpush.msrb.mxu0 %v2481_v35  ;;  %1130 = vmatpush.msrb.mxu3 %v2456_v55  ;;  %v1035_v14 = vand.u32 4294901760, %v2600_v16  ;;  %v1043_v13 = vand.u32 4294901760, %v1042_v5 }
  0x8b   :  { %868 = vmatmul.f32.gmra.mxu3 %v2258_v2  ;;  %984 = vmatpush.msrb.mxu1 %v983_v58  ;;  %v1012_v2 = vsub.f32 %v2552_v53, %v1011_v54 }
  0x8c   :  { %754 = vmatmul.f32.gmra.mxu1 %v2312_v30  ;;  %925 = vmatpush.msrb.mxu0 %v2492_v59  ;;  %v1007_v30 = vand.u32 4294901760, %v1006_v0  ;;  %v1036_v23 = vsub.f32 %v2600_v16, %v1035_v14 }
  0x8d   :  { %990 = vmatpush.msrb.mxu1 %v989_v43  ;;  %1132 = vmatpush.msrb.mxu3 %v2466_v7  ;;  %v1013_v15 = vand.u32 4294901760, %v1012_v2  ;;  %v1049_v43 = vand.u32 4294901760, %v1048_v63 }
  0x8e   :  { %927 = vmatpush.msrb.mxu0 %v2515_v1  ;;  %1071 = vmatpush.msrb.mxu2 %v2464_v31  ;;  %v1037_v58 = vand.u32 4294901760, %v1036_v23  ;;  %v2691_v31 = vand.u32 4294901760, %v907_v24 }
  0x8f   :  { %996 = vmatpush.msrb.mxu1 %v995_v40  ;;  %1134 = vmatpush.msrb.mxu3 %v2477_v36  ;;  %v876_v40 = vld [vmem:[#allocation8] sm:$0xff] }
  0x90   :  { %929 = vmatpush.msrb.mxu0 %v2529_v22  ;;  %1074 = vmatpush.msrb.mxu2 %v2475_v25  ;;  %v2664_v27 = vand.u32 4294901760, %v876_v40  ;;  %v2695_v25 = vsub.f32 %v907_v24, %v2691_v31 }
  0x91   :  { %1002 = vmatpush.msrb.mxu1 %v1001_v50  ;;  %1136 = vmatpush.msrb.mxu3 %v2481_v35 }
  0x92   :  { %931 = vmatpush.msrb.mxu0 %v2542_v34  ;;  %1077 = vmatpush.msrb.mxu2 %v2487_v32  ;;  %v2668_v0 = vsub.f32 %v876_v40, %v2664_v27 }
  0x93   :  { %1008 = vmatpush.msrb.mxu1 %v1007_v30  ;;  %1138 = vmatpush.msrb.mxu3 %v2492_v59 }
  0x94   :  { %933 = vmatpush.msrb.mxu0 %v2554_v45  ;;  %1080 = vmatpush.msrb.mxu2 %v2501_v41  ;;  %v1053_v50 = vand.u32 4294901760, %v2668_v0 }
  0x95   :  { %1014 = vmatpush.msrb.mxu1 %v1013_v15  ;;  %1140 = vmatpush.msrb.mxu3 %v2515_v1 }
  0x96   :  { %935 = vmatpush.msrb.mxu0 %v2566_v56  ;;  %1083 = vmatpush.msrb.mxu2 %v2507_v9  ;;  %v1054_v2 = vsub.f32 %v2668_v0, %v1053_v50 }
  0x97   :  { %1020 = vmatpush.msrb.mxu1 %v1019_v28  ;;  %1142 = vmatpush.msrb.mxu3 %v2529_v22 }
  0x98   :  { %937 = vmatpush.msrb.mxu0 %v2578_v8  ;;  %1086 = vmatpush.msrb.mxu2 %v2521_v46  ;;  %v1055_v30 = vand.u32 4294901760, %v1054_v2  ;;  %v903_v46 = vld [vmem:[#allocation8 + $0xd8] sm:$0xff] }
  0x99   :  { %1026 = vmatpush.msrb.mxu1 %v1025_v17  ;;  %1144 = vmatpush.msrb.mxu3 %v2542_v34 }
  0x9a   :  { %939 = vmatpush.msrb.mxu0 %v2590_v37  ;;  %1089 = vmatpush.msrb.mxu2 %v2540_v39 }
  0x9b   :  { %1032 = vmatpush.msrb.mxu1 %v1031_v49  ;;  %1146 = vmatpush.msrb.mxu3 %v2554_v45 }
  0x9c   :  { %941 = vmatpush.msrb.mxu0 %v2602_v29  ;;  %1092 = vmatpush.msrb.mxu2 %v2552_v53  ;;  %v902_v53 = vld [vmem:[#allocation8 + $0xd0] sm:$0xff] }
  0x9d   :  { %1038 = vmatpush.msrb.mxu1 %v1037_v58  ;;  %1148 = vmatpush.msrb.mxu3 %v2566_v56  ;;  %v2743_v10 = vand.u32 4294901760, %v902_v53 }
  0x9e   :  { %1095 = vmatpush.msrb.mxu2 %v2563_v6  ;;  %943 = vmatpush.msrb.mxu0 %v2664_v27 }
  0x9f   :  { %1044 = vmatpush.msrb.mxu1 %v1043_v13  ;;  %1150 = vmatpush.msrb.mxu3 %v2578_v8  ;;  %v2756_v48 = vsub.f32 %v902_v53, %v2743_v10 }
  0xa0   :  { %1098 = vmatpush.msrb.mxu2 %v2576_v42  ;;  %1173 = vmatpush.msra.mxu0 %v963_v60  ;;  %v906_v60 = vld [vmem:[#allocation8 + $0xf0] sm:$0xff]  ;;  %v900_v42 = vld [vmem:[#allocation8 + $0xc0] sm:$0xff] }
  0xa1   :  { %1050 = vmatpush.msrb.mxu1 %v1049_v43  ;;  %1152 = vmatpush.msrb.mxu3 %v2590_v37  ;;  %v2769_v23 = vand.u32 4294901760, %v900_v42 }
  0xa2   :  { %1101 = vmatpush.msrb.mxu2 %v2588_v44  ;;  %1177 = vmatpush.msra.mxu0 %v969_v38  ;;  %v905_v38 = vld [vmem:[#allocation8 + $0xe8] sm:$0xff]  ;;  %v899_v44 = vld [vmem:[#allocation8 + $0xb8] sm:$0xff] }
  0xa3   :  { %1154 = vmatpush.msrb.mxu3 %v2602_v29  ;;  %1056 = vmatpush.msrb.mxu1 %v1055_v30  ;;  %v2783_v5 = vsub.f32 %v900_v42, %v2769_v23  ;;  %v2785_v58 = vand.u32 4294901760, %v899_v44 }
  0xa4   :  { %1104 = vmatpush.msrb.mxu2 %v2600_v16  ;;  %1181 = vmatpush.msra.mxu0 %v975_v4  ;;  %v904_v4 = vld [vmem:[#allocation8 + $0xe0] sm:$0xff]  ;;  %v898_v16 = vld [vmem:[#allocation8 + $0xb0] sm:$0xff] }
  0xa5   :  { %1156 = vmatpush.msrb.mxu3 %v2664_v27  ;;  %1244 = vmatpush.msra.mxu1 %v2439_v47  ;;  %v2699_v47 = vand.u32 4294901760, %v906_v60  ;;  %v1377_v43 = vand.u32 4294901760, %v2783_v5  ;;  %v2798_v40 = vsub.f32 %v899_v44, %v2785_v58  ;;  %v893_v44 = vld [vmem:[#allocation8 + $0x88] sm:$0xff] }
  0xa6   :  { %1107 = vmatpush.msrb.mxu2 %v2612_v57  ;;  %1185 = vmatpush.msra.mxu0 %v981_v52  ;;  %v2722_v52 = vand.u32 4294901760, %v904_v4  ;;  %v2802_v57 = vand.u32 4294901760, %v898_v16 }
  0xa7   :  { %1246 = vmatpush.msra.mxu1 %v2446_v33  ;;  %v1335_v33 = vand.u32 4294901760, %v2695_v25  ;;  %v2705_v32 = vsub.f32 %v906_v60, %v2699_v47  ;;  %v1378_v30 = vsub.f32 %v2783_v5, %v1377_v43  ;;  %v1383_v24 = vand.u32 4294901760, %v2798_v40 }
  0xa8   :  { %1110 = vmatpush.msrb.mxu2 %v2622_v20  ;;  %1189 = vmatpush.msra.mxu0 %v987_v26  ;;  %v2731_v39 = vsub.f32 %v904_v4, %v2722_v52  ;;  %v2812_v20 = vsub.f32 %v898_v16, %v2802_v57 }
  0xa9   :  { %1248 = vmatpush.msra.mxu1 %v2456_v55  ;;  %v2709_v55 = vand.u32 4294901760, %v905_v38  ;;  %v1336_v41 = vsub.f32 %v2695_v25, %v1335_v33  ;;  %v1379_v4 = vand.u32 4294901760, %v1378_v30 }
  0xaa   :  { %1113 = vmatpush.msrb.mxu2 %v2668_v0  ;;  %1193 = vmatpush.msra.mxu0 %v993_v21 }
  0xab   :  { %1250 = vmatpush.msra.mxu1 %v2466_v7  ;;  %v1341_v7 = vand.u32 4294901760, %v2705_v32  ;;  %v2718_v9 = vsub.f32 %v905_v38, %v2709_v55 }
  0xac   :  { %1197 = vmatpush.msra.mxu0 %v999_v62  ;;  %1285 = vmatpush.msra.mxu2 %v2691_v31  ;;  %v2735_v62 = vand.u32 4294901760, %v903_v46 }
  0xad   :  { %1252 = vmatpush.msra.mxu1 %v2477_v36  ;;  %v1337_v36 = vand.u32 4294901760, %v1336_v41  ;;  %v1342_v26 = vsub.f32 %v2705_v32, %v1341_v7  ;;  %v1347_v21 = vand.u32 4294901760, %v2718_v9  ;;  %v1384_v41 = vsub.f32 %v2798_v40, %v1383_v24 }
  0xae   :  { %1201 = vmatpush.msra.mxu0 %v1005_v51  ;;  %1287 = vmatpush.msra.mxu2 %v2699_v47  ;;  %v2746_v6 = vsub.f32 %v903_v46, %v2735_v62 }
  0xaf   :  { %1254 = vmatpush.msra.mxu1 %v2481_v35  ;;  %1338 = vmatpush.msra.mxu3 %v1337_v36  ;;  %v1343_v35 = vand.u32 4294901760, %v1342_v26  ;;  %v1348_v51 = vsub.f32 %v2718_v9, %v1347_v21  ;;  %v1389_v36 = vand.u32 4294901760, %v2812_v20  ;;  %v1385_v26 = vand.u32 4294901760, %v1384_v41 }
  0xb0   :  { %1205 = vmatpush.msra.mxu0 %v1011_v54  ;;  %1289 = vmatpush.msra.mxu2 %v2709_v55  ;;  %v1353_v54 = vand.u32 4294901760, %v2731_v39  ;;  %v1359_v19 = vand.u32 4294901760, %v2746_v6 }
  0xb1   :  { %1256 = vmatpush.msra.mxu1 %v2492_v59  ;;  %1344 = vmatpush.msra.mxu3 %v1343_v35  ;;  %v1349_v59 = vand.u32 4294901760, %v1348_v51  ;;  %v1390_v51 = vsub.f32 %v2812_v20, %v1389_v36 }
  0xb2   :  { %1209 = vmatpush.msra.mxu0 %v1017_v18  ;;  %1291 = vmatpush.msra.mxu2 %v2722_v52  ;;  %v901_v18 = vld [vmem:[#allocation8 + $0xc8] sm:$0xff]  ;;  %v1354_v15 = vsub.f32 %v2731_v39, %v1353_v54  ;;  %v1360_v49 = vsub.f32 %v2746_v6, %v1359_v19 }
  0xb3   :  { %1258 = vmatpush.msra.mxu1 %v2515_v1  ;;  %v2758_v28 = vand.u32 4294901760, %v901_v18  ;;  %1350 = vmatpush.msra.mxu3 %v1349_v59  ;;  %v894_v59 = vld [vmem:[#allocation8 + $0x90] sm:$0xff] }
  0xb4   :  { %1213 = vmatpush.msra.mxu0 %v1023_v12  ;;  %1293 = vmatpush.msra.mxu2 %v2735_v62  ;;  %v1355_v1 = vand.u32 4294901760, %v1354_v15  ;;  %v1365_v12 = vand.u32 4294901760, %v2756_v48  ;;  %v1361_v63 = vand.u32 4294901760, %v1360_v49  ;;  %v2847_v42 = vand.u32 4294901760, %v894_v59 }
  0xb5   :  { %1260 = vmatpush.msra.mxu1 %v2529_v22  ;;  %v2767_v17 = vsub.f32 %v901_v18, %v2758_v28 }
  0xb6   :  { %1217 = vmatpush.msra.mxu0 %v1029_v3  ;;  %1295 = vmatpush.msra.mxu2 %v2743_v10  ;;  %v1366_v22 = vsub.f32 %v2756_v48, %v1365_v12  ;;  %v2859_v16 = vsub.f32 %v894_v59, %v2847_v42 }
  0xb7   :  { %1262 = vmatpush.msra.mxu1 %v2542_v34  ;;  %1356 = vmatpush.msra.mxu3 %v1355_v1  ;;  %v1371_v3 = vand.u32 4294901760, %v2767_v17  ;;  %v2790_v34 = vld [vmem:[#allocation7] sm:$0x3]  ;;  %v1391_v1 = vand.u32 4294901760, %v1390_v51 }
  0xb8   :  { %1221 = vmatpush.msra.mxu0 %v1035_v14  ;;  %1297 = vmatpush.msra.mxu2 %v2758_v28  ;;  %v1367_v14 = vand.u32 4294901760, %v1366_v22  ;;  %v124_v60 = vperm.slane %v2790_v34, 0  ;;  %v3032_v30 = vand.u32 4294901760, %v2859_v16 }
  0xb9   :  { %1264 = vmatpush.msra.mxu1 %v2554_v45  ;;  %v1372_v13 = vsub.f32 %v2767_v17, %v1371_v3  ;;  %1362 = vmatpush.msra.mxu3 %v1361_v63 }
  0xba   :  { %1225 = vmatpush.msra.mxu0 %v1041_v61  ;;  %1299 = vmatpush.msra.mxu2 %v2769_v23  ;;  %v897_v61 = vld [vmem:[#allocation8 + $0xa8] sm:$0xff] }
  0xbb   :  { %1266 = vmatpush.msra.mxu1 %v2566_v56  ;;  %v1373_v45 = vand.u32 4294901760, %v1372_v13  ;;  %1368 = vmatpush.msra.mxu3 %v1367_v14  ;;  %v896_v56 = vld [vmem:[#allocation8 + $0xa0] sm:$0xff]  ;;  %v2861_v14 = vand.u32 4294901760, %v893_v44 }
  0xbc   :  { %1229 = vmatpush.msra.mxu0 %v1047_v11  ;;  %1301 = vmatpush.msra.mxu2 %v2785_v58  ;;  %v2816_v11 = vand.u32 4294901760, %v897_v61  ;;  %v2822_v46 = vand.u32 4294901760, %v896_v56 }
  0xbd   :  { %1268 = vmatpush.msra.mxu1 %v2578_v8  ;;  %1374 = vmatpush.msra.mxu3 %v1373_v45 }
  0xbe   :  { %1233 = vmatpush.msra.mxu0 %v1053_v50  ;;  %1303 = vmatpush.msra.mxu2 %v2802_v57  ;;  %v2827_v0 = vsub.f32 %v897_v61, %v2816_v11  ;;  %v895_v50 = vld [vmem:[#allocation8 + $0x98] sm:$0xff]  ;;  %v2831_v8 = vsub.f32 %v896_v56, %v2822_v46  ;;  %v892_v61 = vld [vmem:[#allocation8 + $0x80] sm:$0xff]  ;;  %v2869_v56 = vsub.f32 %v893_v44, %v2861_v14 }
  0xbf   :  { %1270 = vmatpush.msra.mxu1 %v2590_v37  ;;  %v2833_v53 = vand.u32 4294901760, %v895_v50  ;;  %1380 = vmatpush.msra.mxu3 %v1379_v4  ;;  %v2872_v4 = vand.u32 4294901760, %v892_v61 }
  0xc0   :  { %1305 = vmatpush.msra.mxu2 %v2816_v11  ;;  %v3035_v18 = vand.u32 4294901760, %v2827_v0  ;;  %v3034_v37 = vand.u32 4294901760, %v2831_v8 }
  0xc1   :  { %1272 = vmatpush.msra.mxu1 %v2602_v29  ;;  %v2845_v15 = vsub.f32 %v895_v50, %v2833_v53  ;;  %1386 = vmatpush.msra.mxu3 %v1385_v26  ;;  %v1414_v26 = vsub.f32 %v2859_v16, %v3032_v30  ;;  %v2880_v59 = vsub.f32 %v892_v61, %v2872_v4 }
  0xc2   :  { %1307 = vmatpush.msra.mxu2 %v2822_v46  ;;  %v1396_v49 = vsub.f32 %v2827_v0, %v3035_v18  ;;  %v1402_v29 = vsub.f32 %v2831_v8, %v3034_v37 }
  0xc3   :  { %1274 = vmatpush.msra.mxu1 %v2664_v27  ;;  %v3033_v63 = vand.u32 4294901760, %v2845_v15  ;;  %1392 = vmatpush.msra.mxu3 %v1391_v1  ;;  %v1415_v1 = vand.u32 4294901760, %v1414_v26 }
  0xc4   :  { %1309 = vmatpush.msra.mxu2 %v2833_v53  ;;  %v1403_v45 = vand.u32 4294901760, %v1402_v29 }
  0xc5   :  { %v166_v2 = vpop.f32.mrf.mxu0  ;;  %v1408_v27 = vsub.f32 %v2845_v15, %v3033_v63 }
  0xc6   :  { %v167_v35 = vadd.f32 %v166_v2, %v124_v60  ;;  %v1397_v2 = vand.u32 4294901760, %v1396_v49  ;;  %1311 = vmatpush.msra.mxu2 %v2847_v42 }
  0xc7   :  { %v1409_v50 = vand.u32 4294901760, %v1408_v27 }
  0xc8   :  { %1398 = vmatpush.msra.mxu3 %v1397_v2  ;;  %1313 = vmatpush.msra.mxu2 %v2861_v14  ;;  %v1425_v2 = vand.u32 4294901760, %v2880_v59 }
  0xc9   :  { %v275_v38 = vpop.f32.mrf.mxu1 }
  0xca   :  { %v276_v13 = vadd.f32 %v275_v38, %v167_v35  ;;  %v3031_v35 = vand.u32 4294901760, %v2869_v56  ;;  %1404 = vmatpush.msra.mxu3 %v1403_v45  ;;  %1315 = vmatpush.msra.mxu2 %v2872_v4  ;;  %v1426_v61 = vsub.f32 %v2880_v59, %v1425_v2 }
  0xcc   :  { %v1420_v49 = vsub.f32 %v2869_v56, %v3031_v35  ;;  %1410 = vmatpush.msra.mxu3 %v1409_v50  ;;  %v1427_v35 = vand.u32 4294901760, %v1426_v61 }
  0xce   :  { %1416 = vmatpush.msra.mxu3 %v1415_v1 }
  0xd1   :  { %v174_v22 = vpop.f32.mrf.mxu0 }
  0xd2   :  { %v175_v44 = vadd.f32 %v174_v22, %v124_v60 }
  0xd4   :  { %v279_v41 = vpop.f32.mrf.mxu1 }
  0xd5   :  { %v333_v38 = vpop.f32.mrf.mxu2 }
  0xd6   :  { %v334_v51 = vadd.f32 %v333_v38, %v276_v13  ;;  %v1421_v13 = vand.u32 4294901760, %v1420_v49  ;;  %v280_v38 = vadd.f32 %v279_v41, %v175_v44 }
  0xd8   :  { %v377_v29 = vpop.f32.mrf.mxu3  ;;  %1422 = vmatpush.msra.mxu3 %v1421_v13 }
  0xd9   :  { %v378_v27 = vadd.f32 %v377_v29, %v334_v51 }
  0xda   :  { %1428 = vmatpush.msra.mxu3 %v1427_v35 }
  0xdb   :  { %v452_v45 = vpop.f32.mrf.mxu0 }
  0xdc   :  { %v453_v26 = vadd.f32 %v452_v45, %v378_v27 }
  0xdf   :  { %v493_v30 = vpop.f32.mrf.mxu1  ;;  %v338_v63 = vpop.f32.mrf.mxu2 }
  0xe0   :  { %v494_v60 = vadd.f32 %v493_v30, %v453_v26  ;;  %v339_v22 = vadd.f32 %v338_v63, %v280_v38 }
  0xe2   :  { %v872_v50 = vmax.f32 %v494_v60, 0.0  ;;  %v383_v37 = vpop.f32.mrf.mxu3 }
  0xe3   :  { %v384_v18 = vadd.f32 %v383_v37, %v339_v22 }
  0xe4   :  { %v2892_v51 = vand.u32 4294901760, %v872_v50 }
  0xe5   :  { %v456_v1 = vpop.f32.mrf.mxu0 }
  0xe6   :  { %v945_v49 = vsub.f32 %v872_v50, %v2892_v51  ;;  %v457_v29 = vadd.f32 %v456_v1, %v384_v18  ;;  %1058 = vmatmul.f32.vlgmr.msrb.gmra.mxu1 %v2892_v51 }
  0xe7   :  { %v497_v41 = vpop.f32.mrf.mxu1  ;;  %1498 = vmatpush.msrb.mxu1 %v2691_v31 }
  0xe8   :  { %v946_v44 = vand.u32 4294901760, %v945_v49  ;;  %v498_v35 = vadd.f32 %v497_v41, %v457_v29  ;;  %1116 = vmatmul.f32.vlgmr.msrb.gmra.mxu2 %v945_v49 }
  0xe9   :  { %1500 = vmatpush.msrb.mxu1 %v2699_v47  ;;  %1545 = vmatpush.msrb.mxu2 %v1335_v33 }
  0xea   :  { %v947_v37 = vsub.f32 %v945_v49, %v946_v44  ;;  %v874_v63 = vmax.f32 %v498_v35, 0.0  ;;  %1160 = vmatmul.f32.vlgmr.msrb.gmra.mxu3 %v946_v44 }
  0xeb   :  { %1502 = vmatpush.msrb.mxu1 %v2709_v55  ;;  %1616 = vmatpush.msrb.mxu3 %v2691_v31 }
  0xec   :  { %v2902_v18 = vand.u32 4294901760, %v874_v63  ;;  %v948_v30 = vand.u32 4294901760, %v947_v37  ;;  %1549 = vmatpush.msrb.mxu2 %v1341_v7 }
  0xed   :  { %1504 = vmatpush.msrb.mxu1 %v2722_v52  ;;  %1618 = vmatpush.msrb.mxu3 %v2699_v47 }
  0xee   :  { %v953_v27 = vsub.f32 %v874_v63, %v2902_v18  ;;  %949 = vmatmul.f32.vlgmr.msrb.gmra.mxu0 %v948_v30  ;;  %1062 = vmatmul.f32.gmra.mxu1 %v2902_v18 }
  0xef   :  { %1440 = vmatpush.msrb.mxu0 %v2695_v25  ;;  %1506 = vmatpush.msrb.mxu1 %v2735_v62 }
  0xf0   :  { %1121 = vmatmul.f32.gmra.mxu2 %v953_v27  ;;  %v954_v31 = vand.u32 4294901760, %v953_v27  ;;  %1620 = vmatpush.msrb.mxu3 %v2709_v55 }
  0xf1   :  { %1443 = vmatpush.msrb.mxu0 %v2705_v32  ;;  %1508 = vmatpush.msrb.mxu1 %v2743_v10  ;;  %v125_v32 = vperm.slane %v2790_v34, 1 }
  0xf2   :  { %v538_v33 = vpop.f32.mrf.mxu2  ;;  %v955_v7 = vsub.f32 %v953_v27, %v954_v31  ;;  %1166 = vmatmul.f32.gmra.mxu3 %v954_v31  ;;  %1553 = vmatpush.msrb.mxu2 %v1347_v21 }
  0xf3   :  { %1446 = vmatpush.msrb.mxu0 %v2718_v9  ;;  %1510 = vmatpush.msrb.mxu1 %v2758_v28  ;;  %v539_v55 = vadd.f32 %v538_v33, %v125_v32 }
  0xf4   :  { %v956_v25 = vand.u32 4294901760, %v955_v7  ;;  %1622 = vmatpush.msrb.mxu3 %v2722_v52  ;;  %1557 = vmatpush.msrb.mxu2 %v1353_v54 }
  0xf5   :  { %v647_v47 = vpop.f32.mrf.mxu3  ;;  %1449 = vmatpush.msrb.mxu0 %v2731_v39  ;;  %1512 = vmatpush.msrb.mxu1 %v2769_v23 }
  0xf6   :  { %957 = vmatmul.f32.gmra.mxu0 %v956_v25  ;;  %1276 = vmatmul.f32.vlgmr.msra.gmra.mxu1 %v2892_v51  ;;  %v648_v21 = vadd.f32 %v647_v47, %v539_v55 }
  0xf7   :  { %1452 = vmatpush.msrb.mxu0 %v2746_v6  ;;  %1514 = vmatpush.msrb.mxu1 %v2785_v58 }
  0xf8   :  { %1624 = vmatpush.msrb.mxu3 %v2735_v62  ;;  %1561 = vmatpush.msrb.mxu2 %v1359_v19 }
  0xf9   :  { %1455 = vmatpush.msrb.mxu0 %v2756_v48  ;;  %1516 = vmatpush.msrb.mxu1 %v2802_v57 }
  0xfa   :  { %1626 = vmatpush.msrb.mxu3 %v2743_v10  ;;  %1565 = vmatpush.msrb.mxu2 %v1365_v12  ;;  %v705_v9 = vpop.f32.mrf.mxu0 }
  0xfb   :  { %v546_v52 = vpop.f32.mrf.mxu2  ;;  %1458 = vmatpush.msrb.mxu0 %v2767_v17  ;;  %1518 = vmatpush.msrb.mxu1 %v2816_v11  ;;  %v706_v62 = vadd.f32 %v705_v9, %v648_v21 }
  0xfc   :  { %1628 = vmatpush.msrb.mxu3 %v2758_v28  ;;  %1569 = vmatpush.msrb.mxu2 %v1371_v3  ;;  %v547_v10 = vadd.f32 %v546_v52, %v125_v32  ;;  %v3068_v3 = vand.u32 4294901760, %v2827_v0 }
  0xfd   :  { %1461 = vmatpush.msrb.mxu0 %v2783_v5  ;;  %1520 = vmatpush.msrb.mxu1 %v2822_v46 }
  0xfe   :  { %v651_v39 = vpop.f32.mrf.mxu3  ;;  %1235 = vmatmul.f32.vlgmr.msra.gmra.mxu0 %v2892_v51  ;;  %1280 = vmatmul.f32.gmra.mxu1 %v2902_v18 }
  0xff   :  { %1464 = vmatpush.msrb.mxu0 %v2798_v40  ;;  %1522 = vmatpush.msrb.mxu1 %v2833_v53  ;;  %v652_v12 = vadd.f32 %v651_v39, %v547_v10 }
 0x100   :  { %1630 = vmatpush.msrb.mxu3 %v2769_v23  ;;  %1573 = vmatpush.msrb.mxu2 %v1377_v43  ;;  %v3069_v43 = vand.u32 4294901760, %v2831_v8 }
 0x101   :  { %v749_v54 = vpop.f32.mrf.mxu1  ;;  %1467 = vmatpush.msrb.mxu0 %v2812_v20  ;;  %1524 = vmatpush.msrb.mxu1 %v2847_v42 }
 0x102   :  { %v750_v6 = vadd.f32 %v749_v54, %v706_v62  ;;  %1632 = vmatpush.msrb.mxu3 %v2785_v58  ;;  %1577 = vmatpush.msrb.mxu2 %v1383_v24  ;;  %v710_v28 = vpop.f32.mrf.mxu0  ;;  %v3070_v24 = vand.u32 4294901760, %v2845_v15 }
 0x103   :  { %1470 = vmatpush.msrb.mxu0 %v2827_v0  ;;  %1526 = vmatpush.msrb.mxu1 %v2861_v14  ;;  %v711_v5 = vadd.f32 %v710_v28, %v652_v12  ;;  %v3071_v0 = vand.u32 4294901760, %v2859_v16 }
 0x104   :  { %v824_v48 = vpop.f32.mrf.mxu2  ;;  %1634 = vmatpush.msrb.mxu3 %v2802_v57  ;;  %1581 = vmatpush.msrb.mxu2 %v1389_v36 }
 0x105   :  { %v825_v19 = vadd.f32 %v824_v48, %v750_v6  ;;  %1473 = vmatpush.msrb.mxu0 %v2831_v8  ;;  %1528 = vmatpush.msrb.mxu1 %v2872_v4 }
 0x106   :  { %v865_v17 = vpop.f32.mrf.mxu3  ;;  %1239 = vmatmul.f32.gmra.mxu0 %v2902_v18  ;;  %1636 = vmatpush.msrb.mxu3 %v2816_v11 }
 0x107   :  { %v866_v23 = vadd.f32 %v865_v17, %v825_v19  ;;  %1476 = vmatpush.msrb.mxu0 %v2845_v15  ;;  %1585 = vmatpush.msrb.mxu2 %v3068_v3  ;;  %v3072_v15 = vand.u32 4294901760, %v2869_v56 }
 0x108   :  { %1638 = vmatpush.msrb.mxu3 %v2822_v46 }
 0x109   :  { %v873_v58 = vmax.f32 %v866_v23, 0.0  ;;  %v755_v34 = vpop.f32.mrf.mxu1  ;;  %1479 = vmatpush.msrb.mxu0 %v2859_v16  ;;  %1589 = vmatpush.msrb.mxu2 %v3069_v43 }
 0x10a   :  { %v756_v40 = vadd.f32 %v755_v34, %v711_v5  ;;  %1640 = vmatpush.msrb.mxu3 %v2833_v53  ;;  %v1759_v34 = vld [vmem:[#allocation2] sm:$0xff] }
 0x10b   :  { %v1316_v57 = vand.u32 4294901760, %v873_v58  ;;  %1482 = vmatpush.msrb.mxu0 %v2869_v56  ;;  %1593 = vmatpush.msrb.mxu2 %v3070_v24 }
 0x10c   :  { %v828_v20 = vpop.f32.mrf.mxu2  ;;  %1642 = vmatpush.msrb.mxu3 %v2847_v42 }
 0x10d   :  { %v1317_v11 = vsub.f32 %v873_v58, %v1316_v57  ;;  %v829_v46 = vadd.f32 %v828_v20, %v756_v40  ;;  %1430 = vmatmul.f32.vlgmr.msra.gmra.mxu3 %v1316_v57  ;;  %1485 = vmatpush.msrb.mxu0 %v2880_v59 }
 0x10e   :  { %v869_v36 = vpop.f32.mrf.mxu3  ;;  %1644 = vmatpush.msrb.mxu3 %v2861_v14  ;;  %1597 = vmatpush.msrb.mxu2 %v3071_v0 }
 0x10f   :  { %v1318_v8 = vand.u32 4294901760, %v1317_v11  ;;  %v870_v53 = vadd.f32 %v869_v36, %v829_v46  ;;  %1488 = vmatmul.f32.vlgmr.msrb.gmra.mxu0 %v1317_v11  ;;  %v1760_v36 = vld [vmem:[#allocation2 + $0x8] sm:$0xff] }
 0x110   :  { %1646 = vmatpush.msrb.mxu3 %v2872_v4  ;;  %1601 = vmatpush.msrb.mxu2 %v3072_v15 }
 0x111   :  { %v1319_v42 = vsub.f32 %v1317_v11, %v1318_v8  ;;  %v875_v13 = vmax.f32 %v870_v53, 0.0  ;;  %1532 = vmatmul.f32.vlgmr.msrb.gmra.mxu1 %v1318_v8  ;;  %v1897_v8 = vmov 128.0  }
 0x112   :  { %1605 = vmatpush.msrb.mxu2 %v1425_v2  ;;  %v1750_v2 = vld [vmem:[%s3004_s4] ss:$0 sm:$0xff]  ;;  %1753 = vrcp.f32 %v1897_v8 }
 0x113   :  { %v1324_v61 = vand.u32 4294901760, %v875_v13  ;;  %v1320_v45 = vand.u32 4294901760, %v1319_v42 }
 0x115   :  { %v1325_v14 = vsub.f32 %v875_v13, %v1324_v61  ;;  %1321 = vmatmul.f32.vlgmr.msra.gmra.mxu2 %v1320_v45  ;;  %1434 = vmatmul.f32.gmra.mxu3 %v1324_v61 }
 0x117   :  { %v1326_v16 = vand.u32 4294901760, %v1325_v14  ;;  %1493 = vmatmul.f32.gmra.mxu0 %v1325_v14 }
 0x118   :  { %v1754_v53 = vpop.eup %1753 }
 0x119   :  { %1538 = vmatmul.f32.gmra.mxu1 %v1326_v16  ;;  %v1327_v38 = vsub.f32 %v1325_v14, %v1326_v16  ;;  %v1663_v15 = vmul.f32 128.0, %v1754_v53  ;;  %vm1667_vm0 = vweird.f32 %v1754_v53 }
 0x11b   :  { %v1328_v26 = vand.u32 4294901760, %v1327_v38  ;;  %v1664_v42 = vsub.f32 1.0, %v1663_v15 }
 0x11d   :  { %1329 = vmatmul.f32.gmra.mxu2 %v1328_v26  ;;  %1648 = vmatmul.f32.vlgmr.msrb.gmra.mxu3 %v1316_v57  ;;  %v1665_v13 = vmul.f32 %v1754_v53, %v1664_v42 }
 0x125   :  { %1607 = vmatmul.f32.vlgmr.msrb.gmra.mxu2 %v1316_v57  ;;  %1652 = vmatmul.f32.gmra.mxu3 %v1324_v61 }
 0x12d   :  { %1611 = vmatmul.f32.gmra.mxu2 %v1324_v61  ;;  %v1666_v61 = vadd.f32 %v1754_v53, %v1665_v13 }
 0x12f   :  { %v1668_v45 = vsel %vm1667_vm0, %v1754_v53, %v1666_v61 }
 0x163   :  { %v1059_v4 = vpop.f32.mrf.mxu1 }
 0x16b   :  { %v950_v56 = vpop.f32.mrf.mxu0  ;;  %v1117_v22 = vpop.f32.mrf.mxu2 }
 0x16c   :  { %v951_v50 = vadd.f32 %v1750_v2, %v950_v56  ;;  %v1063_v51 = vpop.f32.mrf.mxu1 }
 0x16d   :  { %v1161_v60 = vpop.f32.mrf.mxu3 }
 0x16e   :  { %v1060_v1 = vadd.f32 %v1059_v4, %v951_v50 }
 0x170   :  { %v1118_v41 = vadd.f32 %v1117_v22, %v1060_v1 }
 0x172   :  { %v1162_v63 = vadd.f32 %v1161_v60, %v1118_v41 }
 0x173   :  { %v958_v59 = vpop.f32.mrf.mxu0  ;;  %v1122_v35 = vpop.f32.mrf.mxu2 }
 0x174   :  { %v959_v44 = vadd.f32 %v1750_v2, %v958_v59  ;;  %v1277_v37 = vpop.f32.mrf.mxu1 }
 0x175   :  { %v1167_v49 = vpop.f32.mrf.mxu3 }
 0x176   :  { %v1064_v18 = vadd.f32 %v1063_v51, %v959_v44 }
 0x178   :  { %v1123_v33 = vadd.f32 %v1122_v35, %v1064_v18 }
 0x17a   :  { %v1168_v47 = vadd.f32 %v1167_v49, %v1123_v33 }
 0x17b   :  { %v1236_v29 = vpop.f32.mrf.mxu0 }
 0x17c   :  { %v1237_v27 = vadd.f32 %v1236_v29, %v1162_v63  ;;  %v1281_v55 = vpop.f32.mrf.mxu1 }
 0x17e   :  { %v1278_v25 = vadd.f32 %v1277_v37, %v1237_v27  ;;  %v1751_v27 = vld [vmem:[%s3005_s5] ss:$0 sm:$0xff]  ;;  %s1723_s5 = sshll.u32 %s1898_s26, 4  ;;  %s1724_s5 = int_to_ptr.vmem [resolvable:$true] %s1723_s5 }
 0x183   :  { %v1240_v31 = vpop.f32.mrf.mxu0 }
 0x184   :  { %v1241_v9 = vadd.f32 %v1240_v31, %v1168_v47 }
 0x186   :  { %v1282_v54 = vadd.f32 %v1281_v55, %v1241_v9 }
 0x18c   :  { %v1489_v39 = vpop.f32.mrf.mxu0 }
 0x18e   :  { %v1533_v48 = vpop.f32.mrf.mxu1 }
 0x190   :  { %v1431_v30 = vpop.f32.mrf.mxu3 }
 0x194   :  { %v1494_v3 = vpop.f32.mrf.mxu0 }
 0x196   :  { %v1539_v40 = vpop.f32.mrf.mxu1 }
 0x198   :  { %v1322_v7 = vpop.f32.mrf.mxu2  ;;  %v1435_v52 = vpop.f32.mrf.mxu3 }
 0x199   :  { %v1323_v32 = vadd.f32 %v1322_v7, %v1278_v25  ;;  %v1752_v25 = vld [vmem:[%s3006_s6] ss:$0 sm:$0xff] }
 0x19b   :  { %v1432_v21 = vadd.f32 %v1431_v30, %v1323_v32 }
 0x19d   :  { %v1490_v6 = vadd.f32 %v1489_v39, %v1432_v21 }
 0x19f   :  { %v1534_v19 = vadd.f32 %v1533_v48, %v1490_v6 }
 0x1a0   :  { %v1330_v62 = vpop.f32.mrf.mxu2  ;;  %v1649_v12 = vpop.f32.mrf.mxu3 }
 0x1a1   :  { %v1331_v10 = vadd.f32 %v1330_v62, %v1282_v54 }
 0x1a3   :  { %v1436_v28 = vadd.f32 %v1435_v52, %v1331_v10 }
 0x1a5   :  { %v1495_v58 = vadd.f32 %v1494_v3, %v1436_v28 }
 0x1a7   :  { %v1540_v57 = vadd.f32 %v1539_v40, %v1495_v58 }
 0x1a8   :  { %v1608_v17 = vpop.f32.mrf.mxu2  ;;  %v1653_v11 = vpop.f32.mrf.mxu3 }
 0x1a9   :  { %v1609_v23 = vadd.f32 %v1608_v17, %v1534_v19 }
 0x1ab   :  { %v1650_v5 = vadd.f32 %v1649_v12, %v1609_v23 }
 0x1ad   :  { %v1656_v43 = vadd.f32 %v1759_v34, %v1650_v5 }
 0x1af   :  { %1658 = vadd.xlane.f32.xlu0 %v1656_v43 }
 0x1b0   :  { %v1612_v24 = vpop.f32.mrf.mxu2 }
 0x1b1   :  { %v1613_v20 = vadd.f32 %v1612_v24, %v1540_v57 }
 0x1b3   :  { %v1654_v46 = vadd.f32 %v1653_v11, %v1613_v20 }
 0x1b5   :  { %v1657_v0 = vadd.f32 %v1760_v36, %v1654_v46 }
 0x1b7   :  { %1660 = vadd.xlane.f32.xlu0 %v1657_v0 }
 0x222   :  { %v1659_v14 = vpop.xlane.xlu0 %1658 }
 0x223   :  { %v1669_v16 = vmul.f32 %v1668_v45, %v1659_v14 }
 0x225   :  { %v1671_v38 = vsub.f32 %v1656_v43, %v1669_v16 }
 0x227   :  { %v1673_v26 = vmul.f32 %v1671_v38, %v1671_v38 }
 0x229   :  { %1675 = vadd.xlane.f32.xlu1 %v1673_v26 }
 0x22a   :  { %v1661_v56 = vpop.xlane.xlu0 %1660 }
 0x22b   :  { %v1670_v4 = vmul.f32 %v1668_v45, %v1661_v56 }
 0x22d   :  { %v1672_v60 = vsub.f32 %v1657_v0, %v1670_v4 }
 0x22f   :  { %v1674_v59 = vmul.f32 %v1672_v60, %v1672_v60 }
 0x231   :  { %1677 = vadd.xlane.f32.xlu1 %v1674_v59 }
 0x29c   :  { %v1676_v2 = vpop.xlane.xlu1 %1675 }
 0x29d   :  { %v1679_v22 = vmul.f32 %v1676_v2, %v1668_v45 }
 0x29f   :  { %v1681_v50 = vadd.f32 1e-05, %v1679_v22 }
 0x2a1   :  { %1755 = vrsqrt.f32 %v1681_v50  ;;  %vm1689_vm2 = vweird.f32 %v1681_v50 }
 0x2a4   :  { %v1678_v51 = vpop.xlane.xlu1 %1677 }
 0x2a5   :  { %v1680_v1 = vmul.f32 %v1678_v51, %v1668_v45 }
 0x2a7   :  { %v1756_v49 = vpop.eup %1755  ;;  %v1682_v29 = vadd.f32 1e-05, %v1680_v1 }
 0x2a8   :  { %v1684_v41 = vmul.f32 %v1756_v49, %v1681_v50  ;;  %vm1690_vm1 = vweird.f32 %v1756_v49 }
 0x2a9   :  { %1757 = vrsqrt.f32 %v1682_v29  ;;  %vm1691_vm3 = vmor %vm1689_vm2, %vm1690_vm1  ;;  %vm1699_vm5 = vweird.f32 %v1682_v29 }
 0x2aa   :  { %v1685_v44 = vmul.f32 %v1756_v49, %v1684_v41 }
 0x2ac   :  { %v1686_v35 = vmul.f32 0.5, %v1685_v44 }
 0x2ae   :  { %v1687_v37 = vsub.f32 1.5, %v1686_v35 }
 0x2af   :  { %v1758_v63 = vpop.eup %1757 }
 0x2b0   :  { %v1688_v18 = vmul.f32 %v1756_v49, %v1687_v37  ;;  %v1694_v30 = vmul.f32 %v1758_v63, %v1682_v29  ;;  %vm1700_vm4 = vweird.f32 %v1758_v63 }
 0x2b1   :  { %vm1701_vm6 = vmor %vm1699_vm5, %vm1700_vm4 }
 0x2b2   :  { %v1692_v31 = vsel %vm1691_vm3, %v1756_v49, %v1688_v18  ;;  %v1695_v33 = vmul.f32 %v1758_v63, %v1694_v30 }
 0x2b3   :  { %v1703_v7 = vmul.f32 %v1692_v31, %v1671_v38 }
 0x2b4   :  { %v1696_v47 = vmul.f32 0.5, %v1695_v33 }
 0x2b5   :  { %v1709_v32 = vmul.f32 %v1751_v27, %v1703_v7 }
 0x2b6   :  { %v1697_v55 = vsub.f32 1.5, %v1696_v47 }
 0x2b7   :  { %v1715_v9 = vadd.f32 %v1752_v25, %v1709_v32 }
 0x2b8   :  { %v1698_v52 = vmul.f32 %v1758_v63, %v1697_v55 }
 0x2b9   :  { %1717 = vst [vmem:[#allocation10] sm:$0xff] %v1715_v9 }
 0x2ba   :  { %v1702_v21 = vsel %vm1701_vm6, %v1758_v63, %v1698_v52 }
 0x2bb   :  { %v1704_v39 = vmul.f32 %v1702_v21, %v1672_v60 }
 0x2bd   :  { %v1710_v62 = vmul.f32 %v1751_v27, %v1704_v39 }
 0x2bf   :  { %v1716_v54 = vadd.f32 %v1752_v25, %v1710_v62 }
 0x2c1   :  { %1718 = vst [vmem:[#allocation10 + $0x8] sm:$0xff] %v1716_v54 }
 0x2c2   :  { %1731 = dma.vmem_to_hbm [thread:$0]  %s1724_s5, 256, %s1726_s29, [#allocation4], %s1893_s13, %s1893_s13, %s1894_s14  }
 0x2c3   :  { %1887 = dma.done.wait [#allocation4], 256  }
 0x2c4   :  { %1888 = vsyncadd [#allocation4], 4294967040 }
 0x2c5   :  { %1736 = vsyncpa [#allocation3], 1 }
 0x2c6   :  { %1737 = vsyncpa [#allocation6], 1 }
 0x2c7   :  { %1738 = vsyncpa [#allocation9], 1 }
 0x2c8   :  { %1739 = vsyncpa [#allocation4], 1 }

</bundles_post_ra>
